<compile_context>
chip_gen: v6e
topology: v6e:2x2x1
jax: 0.10.0
libtpu: 0.0.40
codegen_flags: <defaults>
</compile_context>

<pallas_src>
import math
import functools

import jax
import jax.numpy as jnp
from jax.experimental import pallas as pl
from jax.experimental.pallas import tpu as pltpu


OUT_PAD = 128   # lane-dense padded width of the final (tanh*8) output
TB_MAX = 32     # batch items per grid step; TB*C = 128 fills the v5e MXU.
                # Raise to 64 on v6e/v7x (256-deep MXU); VMEM is not a limit here.


def _round_up(x, m):
    return (x + m - 1) // m * m


# ------------------------------ fused kernel ------------------------------- #

def fused_forward_kernel(*refs, n_color, n_poly, n_comb_rest):
    """One grid step == TB batch items, class-major layout.

    refs = [xc, xp,
            (w,b)*n_color, (w,b)*n_poly,
            w_comb0_seg*6, b_comb0,
            (w,b)*n_comb_rest,
            out]
    All weights live in VMEM for the whole kernel; only the lane/sublane-dense
    (TB, OUT_PAD) slab is stored per step.
    """
    xc_ref, xp_ref = refs[0], refs[1]
    idx = 2
    color_layers = [(refs[idx + 2 * i], refs[idx + 2 * i + 1]) for i in range(n_color)]
    idx += 2 * n_color
    poly_layers = [(refs[idx + 2 * i], refs[idx + 2 * i + 1]) for i in range(n_poly)]
    idx += 2 * n_poly
    comb0_w = refs[idx:idx + 6]
    comb0_b = refs[idx + 6]
    idx += 7
    comb_rest = [(refs[idx + 2 * i], refs[idx + 2 * i + 1]) for i in range(n_comb_rest)]
    out_ref = refs[-1]

    C, TB, Fc = xc_ref.shape
    Fp = xp_ref.shape[-1]

    def mlp(h, layers):
        for (w_ref, b_ref) in layers[:-1]:
            h = jnp.dot(h, w_ref[...], preferred_element_type=jnp.float32) + b_ref[...]
            h = jnp.maximum(h, 0.0)
        w_ref, b_ref = layers[-1]
        return jnp.dot(h, w_ref[...], preferred_element_type=jnp.float32) + b_ref[...]

    def pool(h):
        # h: (C*TB, F); class c occupies rows [c*TB, (c+1)*TB).  Static,
        # sublane-aligned slices -> pure VPU reductions, no relayout and no
        # cross-item mixing (row t within a slab == batch item t of this block).
        acc = h[0:TB]
        mx = acc
        mn = acc
        for c in range(1, C):
            hc = h[c * TB:(c + 1) * TB]
            acc = acc + hc
            mx = jnp.maximum(mx, hc)
            mn = jnp.minimum(mn, hc)
        return acc * (1.0 / C), mx, mn

    # Encoder MLPs on the full (C*TB)-row slab: one MXU pass per layer instead
    # of one per batch item.  The reshape merges the leading class dim into the
    # 8-aligned sublane dim -> layout no-op.
    h_color = mlp(xc_ref[...].reshape(C * TB, Fc), color_layers)   # (C*TB, nh)
    h_poly = mlp(xp_ref[...].reshape(C * TB, Fp), poly_layers)     # (C*TB, nh2)

    # First combined layer as 6 partial matmuls over row-segments of the
    # original weight -> no lane-axis concatenates of the pooled features.
    segs = pool(h_color) + pool(h_poly)     # (mean_c, max_c, min_c, mean_p, max_p, min_p)
    y = comb0_b[...]                        # (1, n) broadcasts over TB rows
    for seg, w_ref in zip(segs, comb0_w):
        y = y + jnp.dot(seg, w_ref[...], preferred_element_type=jnp.float32)

    if n_comb_rest > 0:
        y = jnp.maximum(y, 0.0)
        for (w_ref, b_ref) in comb_rest[:-1]:
            y = jnp.dot(y, w_ref[...], preferred_element_type=jnp.float32) + b_ref[...]
            y = jnp.maximum(y, 0.0)
        w_ref, b_ref = comb_rest[-1]
        y = jnp.dot(y, w_ref[...], preferred_element_type=jnp.float32) + b_ref[...]

    out_ref[...] = (jnp.tanh(y) * 8.0).astype(out_ref.dtype)


# --------------------------------- wrapper ---------------------------------- #

def fused_forward(params, fvs_color, fvs_poly, tb_max=TB_MAX):
    """
    fvs_color: (B, nclasses, 8, 30, 49)  -> slice 9::10 -> (., ., 8, 3, 49)
    fvs_poly : (B, nclasses, 3, 100, 7)  -> slice 9::10 -> (., ., 3, 10, 7)
    returns  : (B, 2) = tanh(MLP_combined(cat(pool(color), pool(poly)))) * 8
    """
    B, C = fvs_color.shape[:2]
    xc = fvs_color[:, :, :, 9::10, :].reshape(B, C, -1).astype(jnp.float32)
    xp = fvs_poly[:, :, :, 9::10, :].reshape(B, C, -1).astype(jnp.float32)
    Fc, Fp = xc.shape[-1], xp.shape[-1]

    # Batch tile: TB items per grid step (TB % 8 == 0 for dense sublane stores).
    TB = min(tb_max, _round_up(B, 8))
    B_pad = _round_up(B, TB)
    n_blocks = B_pad // TB

    # Class-major layout (C, B_pad, F): the per-step block (C, TB, F) merges to
    # a (C*TB, F) slab inside the kernel with zero sublane repacking.
    xc = jnp.transpose(xc, (1, 0, 2))
    xp = jnp.transpose(xp, (1, 0, 2))
    if B_pad > B:
        pad = ((0, 0), (0, B_pad - B), (0, 0))
        xc = jnp.pad(xc, pad)
        xp = jnp.pad(xp, pad)

    color = [(w, b.reshape(1, -1)) for (w, b) in params["color"]]
    poly = [(w, b.reshape(1, -1)) for (w, b) in params["poly"]]
    comb = list(params["combined"])

    nh = color[-1][0].shape[1]     # encoder_color output width
    nh2 = poly[-1][0].shape[1]     # encoder_polygon output width

    # Zero-pad the final combined layer to OUT_PAD lanes -> unmasked vst.
    w_last, b_last = comb[-1]
    nout = w_last.shape[1]
    w_pad = jnp.zeros((w_last.shape[0], OUT_PAD), jnp.float32).at[:, :nout].set(w_last)
    b_pad = jnp.zeros((OUT_PAD,), jnp.float32).at[:nout].set(b_last)
    comb[-1] = (w_pad, b_pad)

    # Split the first combined-layer weight into its 6 pooled-feature row
    # segments (mean/max/min of color, then poly) -> kernel never concatenates.
    w0, b0 = comb[0]
    offs = [0, nh, 2 * nh, 3 * nh, 3 * nh + nh2, 3 * nh + 2 * nh2, 3 * nh + 3 * nh2]
    comb0_w = [w0[offs[i]:offs[i + 1], :] for i in range(6)]
    comb0_b = b0.reshape(1, -1)
    comb_rest = [(w, b.reshape(1, -1)) for (w, b) in comb[1:]]

    weight_arrays = ([a for pair in color for a in pair]
                     + [a for pair in poly for a in pair]
                     + comb0_w + [comb0_b]
                     + [a for pair in comb_rest for a in pair])

    in_specs = [
        pl.BlockSpec((C, TB, Fc), lambda b: (0, b, 0)),   # per-block color features
        pl.BlockSpec((C, TB, Fp), lambda b: (0, b, 0)),   # per-block poly features
    ]
    for arr in weight_arrays:
        # Whole weight/bias resident in VMEM; constant block index -> fetched once.
        in_specs.append(pl.BlockSpec(arr.shape, lambda b: (0, 0)))

    # Advisory cost estimate so XLA schedules the slicing producer / output
    # slice sensibly around the custom call.
    flops = sum(2 * B_pad * C * w.shape[0] * w.shape[1] for (w, _) in color + poly)
    flops += sum(2 * B_pad * w.shape[0] * w.shape[1] for w in comb0_w)
    flops += sum(2 * B_pad * w.shape[0] * w.shape[1] for (w, _) in comb_rest)
    param_bytes = sum(int(a.size) * 4 for a in weight_arrays)
    bytes_accessed = (int(xc.size) + int(xp.size)) * 4 + param_bytes + B_pad * OUT_PAD * 4
    cost = pl.CostEstimate(flops=int(flops),
                           transcendentals=int(B_pad * OUT_PAD),
                           bytes_accessed=int(bytes_accessed))

    kernel = functools.partial(
        fused_forward_kernel,
        n_color=len(color), n_poly=len(poly), n_comb_rest=len(comb_rest))

    out = pl.pallas_call(
        kernel,
        out_shape=jax.ShapeDtypeStruct((B_pad, OUT_PAD), jnp.float32),
        grid=(n_blocks,),
        in_specs=in_specs,
        out_specs=pl.BlockSpec((TB, OUT_PAD), lambda b: (b, 0)),
        compiler_params=pltpu.CompilerParams(dimension_semantics=("parallel",)),
        cost_estimate=cost,
    )(xc, xp, *weight_arrays)

    return out[:B, :nout]


# ------------------------- parameter initialization ------------------------ #

def init_linear(key, fan_in, fan_out):
    # PyTorch nn.Linear default: U(-1/sqrt(fan_in), 1/sqrt(fan_in))
    bound = 1.0 / math.sqrt(fan_in)
    kw, kb = jax.random.split(key)
    w = jax.random.uniform(kw, (fan_in, fan_out), dtype=jnp.float32,
                           minval=-bound, maxval=bound)
    b = jax.random.uniform(kb, (fan_out,), dtype=jnp.float32,
                           minval=-bound, maxval=bound)
    return w, b


def init_mlp(key, ninput, nh, noutput, nlayers):
    keys = jax.random.split(key, max(nlayers, 1))
    layers = []
    if nlayers == 1:
        layers.append(init_linear(keys[0], ninput, noutput))
    else:
        layers.append(init_linear(keys[0], ninput, nh))
        for i in range(nlayers - 2):
            layers.append(init_linear(keys[i + 1], nh, nh))
        layers.append(init_linear(keys[nlayers - 1], nh, noutput))
    return layers


# ---------------------------- pure-JAX reference ---------------------------- #

def reference_forward(params, fvs_color, fvs_poly):
    B, C = fvs_color.shape[:2]

    def mlp(layers, x):
        h = x
        for (w, b) in layers[:-1]:
            h = jnp.maximum(h @ w + b, 0.0)
        w, b = layers[-1]
        return h @ w + b

    xc = fvs_color[:, :, :, 9::10, :].reshape(B * C, -1)
    hc = mlp(params["color"], xc).reshape(B, C, -1)
    hc = jnp.concatenate([hc.mean(1), hc.max(1), hc.min(1)], axis=1)
    xp = fvs_poly[:, :, :, 9::10, :].reshape(B * C, -1)
    hp = mlp(params["poly"], xp).reshape(B, C, -1)
    hp = jnp.concatenate([hp.mean(1), hp.max(1), hp.min(1)], axis=1)
    fv = jnp.concatenate([hc, hp], axis=1)
    return jnp.tanh(mlp(params["combined"], fv)) * 8.0


# ---------------------------------- driver ---------------------------------- #

if __name__ == "__main__":
    # hyper-params (would come from `params` in the PyTorch module)
    nh, nh2, nh3 = 32, 16, 32
    nlayers, nlayers2, nlayers3 = 2, 2, 2
    B, nclasses = 2, 4

    root = jax.random.PRNGKey(0)
    k_color, k_poly, k_comb, k_x1, k_x2 = jax.random.split(root, 5)

    params = {
        "color": init_mlp(k_color, 8 * 3 * 49, nh, nh, nlayers),
        "poly": init_mlp(k_poly, 3 * 10 * 7, nh2, nh2, nlayers2),
        "combined": init_mlp(k_comb, 3 * nh + 3 * nh2, nh3, 2, nlayers3),
    }
    # TODO(synk): MLP.bn (LayerNorm) and new.w / new.b are never used in the
    # reference forward pass, so they are intentionally not materialized.

    # Input shapes dictated by the slicing/view in forward:
    #   color: niter=30 -> 9::10 gives 3 samples; 8 rounds * 3 * 49 = 1176
    #   poly : niter=100 -> 9::10 gives 10 samples; 3 rounds * 10 * 7 = 210
    fvs_color = jax.random.normal(k_x1, (B, nclasses, 8, 30, 49), dtype=jnp.float32)
    fvs_poly = jax.random.normal(k_x2, (B, nclasses, 3, 100, 7), dtype=jnp.float32)

    out = jax.jit(fused_forward)(params, fvs_color, fvs_poly)
    out = jax.block_until_ready(out)
    assert out.shape == (B, 2)

    ref = reference_forward(params, fvs_color, fvs_poly)
    # Kernel MXU f32 passes may differ slightly from XLA's default-precision dot.
    max_err = float(jnp.max(jnp.abs(out - ref)))
    assert max_err < 1e-2, f"mismatch vs reference: max |err| = {max_err}"
    assert bool(jnp.all(jnp.abs(out) <= 8.0))  # tanh(.)*8 range check
    print("KERNEL_OK")
</pallas_src>

<mosaic_0001>
module attributes {stable_mosaic.version = 11 : i64} {
  func.func @fused_forward_kernel(%arg0: i32, %arg1: memref<4x8x1176xf32, #tpu.memory_space<vmem>>, %arg2: memref<4x8x210xf32, #tpu.memory_space<vmem>>, %arg3: memref<1176x32xf32, #tpu.memory_space<vmem>>, %arg4: memref<1x32xf32, #tpu.memory_space<vmem>>, %arg5: memref<32x32xf32, #tpu.memory_space<vmem>>, %arg6: memref<1x32xf32, #tpu.memory_space<vmem>>, %arg7: memref<210x16xf32, #tpu.memory_space<vmem>>, %arg8: memref<1x16xf32, #tpu.memory_space<vmem>>, %arg9: memref<16x16xf32, #tpu.memory_space<vmem>>, %arg10: memref<1x16xf32, #tpu.memory_space<vmem>>, %arg11: memref<32x32xf32, #tpu.memory_space<vmem>>, %arg12: memref<32x32xf32, #tpu.memory_space<vmem>>, %arg13: memref<32x32xf32, #tpu.memory_space<vmem>>, %arg14: memref<16x32xf32, #tpu.memory_space<vmem>>, %arg15: memref<16x32xf32, #tpu.memory_space<vmem>>, %arg16: memref<16x32xf32, #tpu.memory_space<vmem>>, %arg17: memref<1x32xf32, #tpu.memory_space<vmem>>, %arg18: memref<32x128xf32, #tpu.memory_space<vmem>>, %arg19: memref<1x128xf32, #tpu.memory_space<vmem>>, %arg20: memref<8x128xf32, #tpu.memory_space<vmem>>) attributes {dimension_semantics = [#tpu.dimension_semantics<parallel>], iteration_bounds = array<i64: 1>, scalar_prefetch = 0 : i64, scratch_operands = 0 : i64, tpu.core_type = #tpu.core_type<tc>, window_params = [{transform_indices = @transform_0, window_bounds = array<i64: 4, 8, 1176>}, {transform_indices = @transform_1, window_bounds = array<i64: 4, 8, 210>}, {pipeline_mode = #tpu.pipeline_mode<synchronous>, transform_indices = @transform_2, window_bounds = array<i64: 1176, 32>}, {pipeline_mode = #tpu.pipeline_mode<synchronous>, transform_indices = @transform_3, window_bounds = array<i64: 1, 32>}, {pipeline_mode = #tpu.pipeline_mode<synchronous>, transform_indices = @transform_4, window_bounds = array<i64: 32, 32>}, {pipeline_mode = #tpu.pipeline_mode<synchronous>, transform_indices = @transform_5, window_bounds = array<i64: 1, 32>}, {pipeline_mode = #tpu.pipeline_mode<synchronous>, transform_indices = @transform_6, window_bounds = array<i64: 210, 16>}, {pipeline_mode = #tpu.pipeline_mode<synchronous>, transform_indices = @transform_7, window_bounds = array<i64: 1, 16>}, {pipeline_mode = #tpu.pipeline_mode<synchronous>, transform_indices = @transform_8, window_bounds = array<i64: 16, 16>}, {pipeline_mode = #tpu.pipeline_mode<synchronous>, transform_indices = @transform_9, window_bounds = array<i64: 1, 16>}, {pipeline_mode = #tpu.pipeline_mode<synchronous>, transform_indices = @transform_10, window_bounds = array<i64: 32, 32>}, {pipeline_mode = #tpu.pipeline_mode<synchronous>, transform_indices = @transform_11, window_bounds = array<i64: 32, 32>}, {pipeline_mode = #tpu.pipeline_mode<synchronous>, transform_indices = @transform_12, window_bounds = array<i64: 32, 32>}, {pipeline_mode = #tpu.pipeline_mode<synchronous>, transform_indices = @transform_13, window_bounds = array<i64: 16, 32>}, {pipeline_mode = #tpu.pipeline_mode<synchronous>, transform_indices = @transform_14, window_bounds = array<i64: 16, 32>}, {pipeline_mode = #tpu.pipeline_mode<synchronous>, transform_indices = @transform_15, window_bounds = array<i64: 16, 32>}, {pipeline_mode = #tpu.pipeline_mode<synchronous>, transform_indices = @transform_16, window_bounds = array<i64: 1, 32>}, {pipeline_mode = #tpu.pipeline_mode<synchronous>, transform_indices = @transform_17, window_bounds = array<i64: 32, 128>}, {pipeline_mode = #tpu.pipeline_mode<synchronous>, transform_indices = @transform_18, window_bounds = array<i64: 1, 128>}, {transform_indices = @transform_19, window_bounds = array<i64: 8, 128>}]} {
    %c0 = arith.constant 0 : index
    %c0_0 = arith.constant 0 : index
    %c0_1 = arith.constant 0 : index
    %0 = vector.load %arg1[%c0, %c0_0, %c0_1] : memref<4x8x1176xf32, #tpu.memory_space<vmem>>, vector<4x8x1176xf32>
    %1 = vector.shape_cast %0 : vector<4x8x1176xf32> to vector<32x1176xf32>
    %c0_2 = arith.constant 0 : index
    %c0_3 = arith.constant 0 : index
    %2 = vector.load %arg3[%c0_2, %c0_3] : memref<1176x32xf32, #tpu.memory_space<vmem>>, vector<1176x32xf32>
    %cst = arith.constant dense<0.000000e+00> : vector<32x32xf32>
    %3 = tpu.matmul %1, %2, %cst {dimension_numbers = #tpu.dot_dimension_numbers<[1], [0], [0], [1], [0, 0, 1, 1], [], []>} : vector<32x1176xf32>, vector<1176x32xf32>, vector<32x32xf32> -> vector<32x32xf32>
    %c0_4 = arith.constant 0 : index
    %c0_5 = arith.constant 0 : index
    %4 = vector.load %arg4[%c0_4, %c0_5] : memref<1x32xf32, #tpu.memory_space<vmem>>, vector<1x32xf32>
    %5 = vector.broadcast %4 : vector<1x32xf32> to vector<32x32xf32>
    %6 = arith.addf %3, %5 : vector<32x32xf32>
    %cst_6 = arith.constant 0.000000e+00 : f32
    %7 = vector.broadcast %cst_6 : f32 to vector<32x32xf32>
    %8 = arith.maximumf %6, %7 : vector<32x32xf32>
    %c0_7 = arith.constant 0 : index
    %c0_8 = arith.constant 0 : index
    %9 = vector.load %arg5[%c0_7, %c0_8] : memref<32x32xf32, #tpu.memory_space<vmem>>, vector<32x32xf32>
    %cst_9 = arith.constant dense<0.000000e+00> : vector<32x32xf32>
    %10 = tpu.matmul %8, %9, %cst_9 {dimension_numbers = #tpu.dot_dimension_numbers<[1], [0], [0], [1], [0, 0, 1, 1], [], []>} : vector<32x32xf32>, vector<32x32xf32>, vector<32x32xf32> -> vector<32x32xf32>
    %c0_10 = arith.constant 0 : index
    %c0_11 = arith.constant 0 : index
    %11 = vector.load %arg6[%c0_10, %c0_11] : memref<1x32xf32, #tpu.memory_space<vmem>>, vector<1x32xf32>
    %12 = vector.broadcast %11 : vector<1x32xf32> to vector<32x32xf32>
    %13 = arith.addf %10, %12 : vector<32x32xf32>
    %c0_12 = arith.constant 0 : index
    %c0_13 = arith.constant 0 : index
    %c0_14 = arith.constant 0 : index
    %14 = vector.load %arg2[%c0_12, %c0_13, %c0_14] : memref<4x8x210xf32, #tpu.memory_space<vmem>>, vector<4x8x210xf32>
    %15 = vector.shape_cast %14 : vector<4x8x210xf32> to vector<32x210xf32>
    %c0_15 = arith.constant 0 : index
    %c0_16 = arith.constant 0 : index
    %16 = vector.load %arg7[%c0_15, %c0_16] : memref<210x16xf32, #tpu.memory_space<vmem>>, vector<210x16xf32>
    %cst_17 = arith.constant dense<0.000000e+00> : vector<32x16xf32>
    %17 = tpu.matmul %15, %16, %cst_17 {dimension_numbers = #tpu.dot_dimension_numbers<[1], [0], [0], [1], [0, 0, 1, 1], [], []>} : vector<32x210xf32>, vector<210x16xf32>, vector<32x16xf32> -> vector<32x16xf32>
    %c0_18 = arith.constant 0 : index
    %c0_19 = arith.constant 0 : index
    %18 = vector.load %arg8[%c0_18, %c0_19] : memref<1x16xf32, #tpu.memory_space<vmem>>, vector<1x16xf32>
    %19 = vector.broadcast %18 : vector<1x16xf32> to vector<32x16xf32>
    %20 = arith.addf %17, %19 : vector<32x16xf32>
    %cst_20 = arith.constant 0.000000e+00 : f32
    %21 = vector.broadcast %cst_20 : f32 to vector<32x16xf32>
    %22 = arith.maximumf %20, %21 : vector<32x16xf32>
    %c0_21 = arith.constant 0 : index
    %c0_22 = arith.constant 0 : index
    %23 = vector.load %arg9[%c0_21, %c0_22] : memref<16x16xf32, #tpu.memory_space<vmem>>, vector<16x16xf32>
    %cst_23 = arith.constant dense<0.000000e+00> : vector<32x16xf32>
    %24 = tpu.matmul %22, %23, %cst_23 {dimension_numbers = #tpu.dot_dimension_numbers<[1], [0], [0], [1], [0, 0, 1, 1], [], []>} : vector<32x16xf32>, vector<16x16xf32>, vector<32x16xf32> -> vector<32x16xf32>
    %c0_24 = arith.constant 0 : index
    %c0_25 = arith.constant 0 : index
    %25 = vector.load %arg10[%c0_24, %c0_25] : memref<1x16xf32, #tpu.memory_space<vmem>>, vector<1x16xf32>
    %26 = vector.broadcast %25 : vector<1x16xf32> to vector<32x16xf32>
    %27 = arith.addf %24, %26 : vector<32x16xf32>
    %28 = vector.extract_strided_slice %13 {offsets = [0, 0], sizes = [8, 32], strides = [1, 1]} : vector<32x32xf32> to vector<8x32xf32>
    %29 = vector.extract_strided_slice %13 {offsets = [8, 0], sizes = [8, 32], strides = [1, 1]} : vector<32x32xf32> to vector<8x32xf32>
    %30 = arith.addf %28, %29 : vector<8x32xf32>
    %31 = arith.maximumf %28, %29 : vector<8x32xf32>
    %32 = arith.minimumf %28, %29 : vector<8x32xf32>
    %33 = vector.extract_strided_slice %13 {offsets = [16, 0], sizes = [8, 32], strides = [1, 1]} : vector<32x32xf32> to vector<8x32xf32>
    %34 = arith.addf %30, %33 : vector<8x32xf32>
    %35 = arith.maximumf %31, %33 : vector<8x32xf32>
    %36 = arith.minimumf %32, %33 : vector<8x32xf32>
    %37 = vector.extract_strided_slice %13 {offsets = [24, 0], sizes = [8, 32], strides = [1, 1]} : vector<32x32xf32> to vector<8x32xf32>
    %38 = arith.addf %34, %37 : vector<8x32xf32>
    %39 = arith.maximumf %35, %37 : vector<8x32xf32>
    %40 = arith.minimumf %36, %37 : vector<8x32xf32>
    %cst_26 = arith.constant 2.500000e-01 : f32
    %41 = vector.broadcast %cst_26 : f32 to vector<8x32xf32>
    %42 = arith.mulf %38, %41 : vector<8x32xf32>
    %43 = vector.extract_strided_slice %27 {offsets = [0, 0], sizes = [8, 16], strides = [1, 1]} : vector<32x16xf32> to vector<8x16xf32>
    %44 = vector.extract_strided_slice %27 {offsets = [8, 0], sizes = [8, 16], strides = [1, 1]} : vector<32x16xf32> to vector<8x16xf32>
    %45 = arith.addf %43, %44 : vector<8x16xf32>
    %46 = arith.maximumf %43, %44 : vector<8x16xf32>
    %47 = arith.minimumf %43, %44 : vector<8x16xf32>
    %48 = vector.extract_strided_slice %27 {offsets = [16, 0], sizes = [8, 16], strides = [1, 1]} : vector<32x16xf32> to vector<8x16xf32>
    %49 = arith.addf %45, %48 : vector<8x16xf32>
    %50 = arith.maximumf %46, %48 : vector<8x16xf32>
    %51 = arith.minimumf %47, %48 : vector<8x16xf32>
    %52 = vector.extract_strided_slice %27 {offsets = [24, 0], sizes = [8, 16], strides = [1, 1]} : vector<32x16xf32> to vector<8x16xf32>
    %53 = arith.addf %49, %52 : vector<8x16xf32>
    %54 = arith.maximumf %50, %52 : vector<8x16xf32>
    %55 = arith.minimumf %51, %52 : vector<8x16xf32>
    %cst_27 = arith.constant 2.500000e-01 : f32
    %56 = vector.broadcast %cst_27 : f32 to vector<8x16xf32>
    %57 = arith.mulf %53, %56 : vector<8x16xf32>
    %c0_28 = arith.constant 0 : index
    %c0_29 = arith.constant 0 : index
    %58 = vector.load %arg17[%c0_28, %c0_29] : memref<1x32xf32, #tpu.memory_space<vmem>>, vector<1x32xf32>
    %c0_30 = arith.constant 0 : index
    %c0_31 = arith.constant 0 : index
    %59 = vector.load %arg11[%c0_30, %c0_31] : memref<32x32xf32, #tpu.memory_space<vmem>>, vector<32x32xf32>
    %cst_32 = arith.constant dense<0.000000e+00> : vector<8x32xf32>
    %60 = tpu.matmul %42, %59, %cst_32 {dimension_numbers = #tpu.dot_dimension_numbers<[1], [0], [0], [1], [0, 0, 1, 1], [], []>} : vector<8x32xf32>, vector<32x32xf32>, vector<8x32xf32> -> vector<8x32xf32>
    %61 = vector.broadcast %58 : vector<1x32xf32> to vector<8x32xf32>
    %62 = arith.addf %61, %60 : vector<8x32xf32>
    %c0_33 = arith.constant 0 : index
    %c0_34 = arith.constant 0 : index
    %63 = vector.load %arg12[%c0_33, %c0_34] : memref<32x32xf32, #tpu.memory_space<vmem>>, vector<32x32xf32>
    %cst_35 = arith.constant dense<0.000000e+00> : vector<8x32xf32>
    %64 = tpu.matmul %39, %63, %cst_35 {dimension_numbers = #tpu.dot_dimension_numbers<[1], [0], [0], [1], [0, 0, 1, 1], [], []>} : vector<8x32xf32>, vector<32x32xf32>, vector<8x32xf32> -> vector<8x32xf32>
    %65 = arith.addf %62, %64 : vector<8x32xf32>
    %c0_36 = arith.constant 0 : index
    %c0_37 = arith.constant 0 : index
    %66 = vector.load %arg13[%c0_36, %c0_37] : memref<32x32xf32, #tpu.memory_space<vmem>>, vector<32x32xf32>
    %cst_38 = arith.constant dense<0.000000e+00> : vector<8x32xf32>
    %67 = tpu.matmul %40, %66, %cst_38 {dimension_numbers = #tpu.dot_dimension_numbers<[1], [0], [0], [1], [0, 0, 1, 1], [], []>} : vector<8x32xf32>, vector<32x32xf32>, vector<8x32xf32> -> vector<8x32xf32>
    %68 = arith.addf %65, %67 : vector<8x32xf32>
    %c0_39 = arith.constant 0 : index
    %c0_40 = arith.constant 0 : index
    %69 = vector.load %arg14[%c0_39, %c0_40] : memref<16x32xf32, #tpu.memory_space<vmem>>, vector<16x32xf32>
    %cst_41 = arith.constant dense<0.000000e+00> : vector<8x32xf32>
    %70 = tpu.matmul %57, %69, %cst_41 {dimension_numbers = #tpu.dot_dimension_numbers<[1], [0], [0], [1], [0, 0, 1, 1], [], []>} : vector<8x16xf32>, vector<16x32xf32>, vector<8x32xf32> -> vector<8x32xf32>
    %71 = arith.addf %68, %70 : vector<8x32xf32>
    %c0_42 = arith.constant 0 : index
    %c0_43 = arith.constant 0 : index
    %72 = vector.load %arg15[%c0_42, %c0_43] : memref<16x32xf32, #tpu.memory_space<vmem>>, vector<16x32xf32>
    %cst_44 = arith.constant dense<0.000000e+00> : vector<8x32xf32>
    %73 = tpu.matmul %54, %72, %cst_44 {dimension_numbers = #tpu.dot_dimension_numbers<[1], [0], [0], [1], [0, 0, 1, 1], [], []>} : vector<8x16xf32>, vector<16x32xf32>, vector<8x32xf32> -> vector<8x32xf32>
    %74 = arith.addf %71, %73 : vector<8x32xf32>
    %c0_45 = arith.constant 0 : index
    %c0_46 = arith.constant 0 : index
    %75 = vector.load %arg16[%c0_45, %c0_46] : memref<16x32xf32, #tpu.memory_space<vmem>>, vector<16x32xf32>
    %cst_47 = arith.constant dense<0.000000e+00> : vector<8x32xf32>
    %76 = tpu.matmul %55, %75, %cst_47 {dimension_numbers = #tpu.dot_dimension_numbers<[1], [0], [0], [1], [0, 0, 1, 1], [], []>} : vector<8x16xf32>, vector<16x32xf32>, vector<8x32xf32> -> vector<8x32xf32>
    %77 = arith.addf %74, %76 : vector<8x32xf32>
    %cst_48 = arith.constant 0.000000e+00 : f32
    %78 = vector.broadcast %cst_48 : f32 to vector<8x32xf32>
    %79 = arith.maximumf %77, %78 : vector<8x32xf32>
    %c0_49 = arith.constant 0 : index
    %c0_50 = arith.constant 0 : index
    %80 = vector.load %arg18[%c0_49, %c0_50] : memref<32x128xf32, #tpu.memory_space<vmem>>, vector<32x128xf32>
    %cst_51 = arith.constant dense<0.000000e+00> : vector<8x128xf32>
    %81 = tpu.matmul %79, %80, %cst_51 {dimension_numbers = #tpu.dot_dimension_numbers<[1], [0], [0], [1], [0, 0, 1, 1], [], []>} : vector<8x32xf32>, vector<32x128xf32>, vector<8x128xf32> -> vector<8x128xf32>
    %c0_52 = arith.constant 0 : index
    %c0_53 = arith.constant 0 : index
    %82 = vector.load %arg19[%c0_52, %c0_53] : memref<1x128xf32, #tpu.memory_space<vmem>>, vector<1x128xf32>
    %83 = vector.broadcast %82 : vector<1x128xf32> to vector<8x128xf32>
    %84 = arith.addf %81, %83 : vector<8x128xf32>
    %85 = math.tanh %84 : vector<8x128xf32>
    %cst_54 = arith.constant 8.000000e+00 : f32
    %86 = vector.broadcast %cst_54 : f32 to vector<8x128xf32>
    %87 = arith.mulf %85, %86 : vector<8x128xf32>
    %c0_55 = arith.constant 0 : index
    %c0_56 = arith.constant 0 : index
    %88 = vector.load %arg20[%c0_55, %c0_56] : memref<8x128xf32, #tpu.memory_space<vmem>>, vector<8x128xf32>
    tpu.vector_store %arg20[%c0_55, %c0_56], %87 {strides = array<i32>} : memref<8x128xf32, #tpu.memory_space<vmem>>, vector<8x128xf32>,
    return
  }
  func.func @transform_0(%arg0: i32) -> (i32, i32, i32) {
    %c0_i32 = arith.constant 0 : i32
    %c0_i32_0 = arith.constant 0 : i32
    %c0_i32_1 = arith.constant 0 : i32
    return %c0_i32, %arg0, %c0_i32_0 : i32, i32, i32
  }
  func.func @transform_1(%arg0: i32) -> (i32, i32, i32) {
    %c0_i32 = arith.constant 0 : i32
    %c0_i32_0 = arith.constant 0 : i32
    %c0_i32_1 = arith.constant 0 : i32
    return %c0_i32, %arg0, %c0_i32_0 : i32, i32, i32
  }
  func.func @transform_2(%arg0: i32) -> (i32, i32) {
    %c0_i32 = arith.constant 0 : i32
    %c0_i32_0 = arith.constant 0 : i32
    %c0_i32_1 = arith.constant 0 : i32
    return %c0_i32, %c0_i32_0 : i32, i32
  }
  func.func @transform_3(%arg0: i32) -> (i32, i32) {
    %c0_i32 = arith.constant 0 : i32
    %c0_i32_0 = arith.constant 0 : i32
    %c0_i32_1 = arith.constant 0 : i32
    return %c0_i32, %c0_i32_0 : i32, i32
  }
  func.func @transform_4(%arg0: i32) -> (i32, i32) {
    %c0_i32 = arith.constant 0 : i32
    %c0_i32_0 = arith.constant 0 : i32
    %c0_i32_1 = arith.constant 0 : i32
    return %c0_i32, %c0_i32_0 : i32, i32
  }
  func.func @transform_5(%arg0: i32) -> (i32, i32) {
    %c0_i32 = arith.constant 0 : i32
    %c0_i32_0 = arith.constant 0 : i32
    %c0_i32_1 = arith.constant 0 : i32
    return %c0_i32, %c0_i32_0 : i32, i32
  }
  func.func @transform_6(%arg0: i32) -> (i32, i32) {
    %c0_i32 = arith.constant 0 : i32
    %c0_i32_0 = arith.constant 0 : i32
    %c0_i32_1 = arith.constant 0 : i32
    return %c0_i32, %c0_i32_0 : i32, i32
  }
  func.func @transform_7(%arg0: i32) -> (i32, i32) {
    %c0_i32 = arith.constant 0 : i32
    %c0_i32_0 = arith.constant 0 : i32
    %c0_i32_1 = arith.constant 0 : i32
    return %c0_i32, %c0_i32_0 : i32, i32
  }
  func.func @transform_8(%arg0: i32) -> (i32, i32) {
    %c0_i32 = arith.constant 0 : i32
    %c0_i32_0 = arith.constant 0 : i32
    %c0_i32_1 = arith.constant 0 : i32
    return %c0_i32, %c0_i32_0 : i32, i32
  }
  func.func @transform_9(%arg0: i32) -> (i32, i32) {
    %c0_i32 = arith.constant 0 : i32
    %c0_i32_0 = arith.constant 0 : i32
    %c0_i32_1 = arith.constant 0 : i32
    return %c0_i32, %c0_i32_0 : i32, i32
  }
  func.func @transform_10(%arg0: i32) -> (i32, i32) {
    %c0_i32 = arith.constant 0 : i32
    %c0_i32_0 = arith.constant 0 : i32
    %c0_i32_1 = arith.constant 0 : i32
    return %c0_i32, %c0_i32_0 : i32, i32
  }
  func.func @transform_11(%arg0: i32) -> (i32, i32) {
    %c0_i32 = arith.constant 0 : i32
    %c0_i32_0 = arith.constant 0 : i32
    %c0_i32_1 = arith.constant 0 : i32
    return %c0_i32, %c0_i32_0 : i32, i32
  }
  func.func @transform_12(%arg0: i32) -> (i32, i32) {
    %c0_i32 = arith.constant 0 : i32
    %c0_i32_0 = arith.constant 0 : i32
    %c0_i32_1 = arith.constant 0 : i32
    return %c0_i32, %c0_i32_0 : i32, i32
  }
  func.func @transform_13(%arg0: i32) -> (i32, i32) {
    %c0_i32 = arith.constant 0 : i32
    %c0_i32_0 = arith.constant 0 : i32
    %c0_i32_1 = arith.constant 0 : i32
    return %c0_i32, %c0_i32_0 : i32, i32
  }
  func.func @transform_14(%arg0: i32) -> (i32, i32) {
    %c0_i32 = arith.constant 0 : i32
    %c0_i32_0 = arith.constant 0 : i32
    %c0_i32_1 = arith.constant 0 : i32
    return %c0_i32, %c0_i32_0 : i32, i32
  }
  func.func @transform_15(%arg0: i32) -> (i32, i32) {
    %c0_i32 = arith.constant 0 : i32
    %c0_i32_0 = arith.constant 0 : i32
    %c0_i32_1 = arith.constant 0 : i32
    return %c0_i32, %c0_i32_0 : i32, i32
  }
  func.func @transform_16(%arg0: i32) -> (i32, i32) {
    %c0_i32 = arith.constant 0 : i32
    %c0_i32_0 = arith.constant 0 : i32
    %c0_i32_1 = arith.constant 0 : i32
    return %c0_i32, %c0_i32_0 : i32, i32
  }
  func.func @transform_17(%arg0: i32) -> (i32, i32) {
    %c0_i32 = arith.constant 0 : i32
    %c0_i32_0 = arith.constant 0 : i32
    %c0_i32_1 = arith.constant 0 : i32
    return %c0_i32, %c0_i32_0 : i32, i32
  }
  func.func @transform_18(%arg0: i32) -> (i32, i32) {
    %c0_i32 = arith.constant 0 : i32
    %c0_i32_0 = arith.constant 0 : i32
    %c0_i32_1 = arith.constant 0 : i32
    return %c0_i32, %c0_i32_0 : i32, i32
  }
  func.func @transform_19(%arg0: i32) -> (i32, i32) {
    %c0_i32 = arith.constant 0 : i32
    %c0_i32_0 = arith.constant 0 : i32
    return %arg0, %c0_i32 : i32, i32
  }
}

</mosaic_0001>

<bundles_post_ra>
// kernel: fused_forward.1
= control target key start
LH: loop header
LB: loop body
LE: loop exit
PB: predicated region body
PF: predicated region fallthrough
CT: control target
= control target key end

     0   :  { %vm256_vm0 = vcmask 195584   ;;  %vm709_vm1 = vcmask 261120   ;;  %vm849_vm2 = vcmask 670720   ;;  %vm862_vm3 = vcmask 1041408   ;;  %s2968_s2 = inlined_call_operand.vmem [shape: f32[1176,32], index: 2, kind: input, shape index: {}]   ;;  %s2969_s0 = inlined_call_operand.vmem [shape: f32[4,8,1176], index: 0, kind: input, shape index: {}]   ;;  %s2970_s4 = inlined_call_operand.vmem [shape: f32[32,32], index: 4, kind: input, shape index: {}]   ;;  %s2971_s3 = inlined_call_operand.vmem [shape: f32[1,32], index: 3, kind: input, shape index: {}]   ;;  %s2972_s6 = inlined_call_operand.vmem [shape: f32[210,16], index: 6, kind: input, shape index: {}]   ;;  %s2973_s1 = inlined_call_operand.vmem [shape: f32[4,8,210], index: 1, kind: input, shape index: {}]   ;;  %s2974_s10 = inlined_call_operand.vmem [shape: f32[32,32], index: 10, kind: input, shape index: {}]   ;;  %s2975_s8 = inlined_call_operand.vmem [shape: f32[16,16], index: 8, kind: input, shape index: {}]   ;;  %s2976_s5 = inlined_call_operand.vmem [shape: f32[1,32], index: 5, kind: input, shape index: {}]   ;;  %s2977_s7 = inlined_call_operand.vmem [shape: f32[1,16], index: 7, kind: input, shape index: {}]   ;;  %s2978_s11 = inlined_call_operand.vmem [shape: f32[32,32], index: 11, kind: input, shape index: {}]   ;;  %s2979_s12 = inlined_call_operand.vmem [shape: f32[32,32], index: 12, kind: input, shape index: {}]   ;;  %s2980_s15 = inlined_call_operand.vmem [shape: f32[16,32], index: 15, kind: input, shape index: {}]   ;;  %s2981_s13 = inlined_call_operand.vmem [shape: f32[16,32], index: 13, kind: input, shape index: {}]   ;;  %s2982_s9 = inlined_call_operand.vmem [shape: f32[1,16], index: 9, kind: input, shape index: {}]   ;;  %s2983_s16 = inlined_call_operand.vmem [shape: f32[1,32], index: 16, kind: input, shape index: {}]   ;;  %s2984_s14 = inlined_call_operand.vmem [shape: f32[16,32], index: 14, kind: input, shape index: {}]   ;;  %s2985_s17 = inlined_call_operand.vmem [shape: f32[32,128], index: 17, kind: input, shape index: {}]   ;;  %s2986_s18 = inlined_call_operand.vmem [shape: f32[1,128], index: 18, kind: input, shape index: {}]   ;;  %s2987_s19 = inlined_call_operand.vmem [shape: f32[8,128], index: 19, kind: output, shape index: {}]  }
   0x1   :  { %2991 = sst [smem:[#allocation2_spill]] %s2968_s2  ;;  %vm1986_vm4 = vmmov 0   ;;  %vm964_vm5 = vcmask 130048  }
   0x2   :  { %2992 = sst [smem:[#allocation3_spill]] %s2969_s0 }
   0x3   :  { %2993 = sst [smem:[#allocation4_spill]] %s2970_s4 }
   0x4   :  { %2994 = sst [smem:[#allocation5_spill]] %s2971_s3 }
   0x5   :  { %s2995_s20 = sld [smem:[#allocation2_spill]] }
   0x6   :  { %s2996_s26 = sld [smem:[#allocation3_spill]] }
   0x7   :  { %s2997_s0 = sld [smem:[#allocation4_spill]] }
   0x8   :  { %s2998_s27 = sld [smem:[#allocation5_spill]] }
   0xb   :  { %v133_v0 = vld [vmem:[%s2995_s20 + $0xf8] sm:$0xff]  ;;  %v132_v2 = vld [vmem:[%s2995_s20 + $0xf0] sm:$0xff]  ;;  %v131_v6 = vld [vmem:[%s2995_s20 + $0xe8] sm:$0xff] }
   0xc   :  { %v117_v1 = vld [vmem:[%s2995_s20 + $0x78] sm:$0xff]  ;;  %1673 = vmatprep.subr.mxu0 %v133_v0  ;;  %v116_v4 = vld [vmem:[%s2995_s20 + $0x70] sm:$0xff]  ;;  %v115_v8 = vld [vmem:[%s2995_s20 + $0x68] sm:$0xff] }
   0xd   :  { %v165_v3 = vld [vmem:[%s2995_s20 + $0x1f8] sm:$0xff]  ;;  %1674 = vmatpush3.msra.mxu0 %v117_v1  ;;  %v164_v7 = vld [vmem:[%s2995_s20 + $0x1f0] sm:$0xff]  ;;  %v163_v10 = vld [vmem:[%s2995_s20 + $0x1e8] sm:$0xff] }
   0xe   :  { %v149_v5 = vld [vmem:[%s2995_s20 + $0x178] sm:$0xff]  ;;  %1717 = vmatprep.subr.mxu1 %v165_v3  ;;  %1675 = vmatprep.subr.mxu0 %v132_v2  ;;  %v148_v9 = vld [vmem:[%s2995_s20 + $0x170] sm:$0xff]  ;;  %v130_v11 = vld [vmem:[%s2995_s20 + $0xe0] sm:$0xff] }
   0xf   :  { %1718 = vmatpush3.msra.mxu1 %v149_v5  ;;  %1676 = vmatpush3.msra.mxu0 %v116_v4  ;;  %v147_v12 = vld [vmem:[%s2995_s20 + $0x168] sm:$0xff]  ;;  %v114_v13 = vld [vmem:[%s2995_s20 + $0x60] sm:$0xff]  ;;  %v129_v15 = vld [vmem:[%s2995_s20 + $0xd8] sm:$0xff] }
  0x10   :  { %1719 = vmatprep.subr.mxu1 %v164_v7  ;;  %1677 = vmatprep.subr.mxu0 %v131_v6  ;;  %v162_v14 = vld [vmem:[%s2995_s20 + $0x1e0] sm:$0xff]  ;;  %v113_v17 = vld [vmem:[%s2995_s20 + $0x58] sm:$0xff]  ;;  %v128_v19 = vld [vmem:[%s2995_s20 + $0xd0] sm:$0xff] }
  0x11   :  { %1720 = vmatpush3.msra.mxu1 %v148_v9  ;;  %1678 = vmatpush3.msra.mxu0 %v115_v8  ;;  %v146_v16 = vld [vmem:[%s2995_s20 + $0x160] sm:$0xff]  ;;  %v161_v18 = vld [vmem:[%s2995_s20 + $0x1d8] sm:$0xff]  ;;  %v112_v21 = vld [vmem:[%s2995_s20 + $0x50] sm:$0xff] }
  0x12   :  { %1721 = vmatprep.subr.mxu1 %v163_v10  ;;  %1679 = vmatprep.subr.mxu0 %v130_v11  ;;  %v145_v20 = vld [vmem:[%s2995_s20 + $0x158] sm:$0xff]  ;;  %v160_v22 = vld [vmem:[%s2995_s20 + $0x1d0] sm:$0xff]  ;;  %v127_v23 = vld [vmem:[%s2995_s20 + $0xc8] sm:$0xff] }
  0x13   :  { %1722 = vmatpush3.msra.mxu1 %v147_v12  ;;  %1680 = vmatpush3.msra.mxu0 %v114_v13  ;;  %v144_v24 = vld [vmem:[%s2995_s20 + $0x150] sm:$0xff]  ;;  %v111_v25 = vld [vmem:[%s2995_s20 + $0x48] sm:$0xff]  ;;  %v126_v27 = vld [vmem:[%s2995_s20 + $0xc0] sm:$0xff] }
  0x14   :  { %1723 = vmatprep.subr.mxu1 %v162_v14  ;;  %1681 = vmatprep.subr.mxu0 %v129_v15  ;;  %v159_v26 = vld [vmem:[%s2995_s20 + $0x1c8] sm:$0xff]  ;;  %v110_v29 = vld [vmem:[%s2995_s20 + $0x40] sm:$0xff]  ;;  %v125_v31 = vld [vmem:[%s2995_s20 + $0xb8] sm:$0xff] }
  0x15   :  { %1724 = vmatpush3.msra.mxu1 %v146_v16  ;;  %1682 = vmatpush3.msra.mxu0 %v113_v17  ;;  %v143_v28 = vld [vmem:[%s2995_s20 + $0x148] sm:$0xff]  ;;  %v158_v30 = vld [vmem:[%s2995_s20 + $0x1c0] sm:$0xff]  ;;  %v109_v33 = vld [vmem:[%s2995_s20 + $0x38] sm:$0xff] }
  0x16   :  { %1725 = vmatprep.subr.mxu1 %v161_v18  ;;  %1683 = vmatprep.subr.mxu0 %v128_v19  ;;  %v142_v32 = vld [vmem:[%s2995_s20 + $0x140] sm:$0xff]  ;;  %v157_v34 = vld [vmem:[%s2995_s20 + $0x1b8] sm:$0xff]  ;;  %v124_v35 = vld [vmem:[%s2995_s20 + $0xb0] sm:$0xff] }
  0x17   :  { %1726 = vmatpush3.msra.mxu1 %v145_v20  ;;  %1684 = vmatpush3.msra.mxu0 %v112_v21  ;;  %v141_v36 = vld [vmem:[%s2995_s20 + $0x138] sm:$0xff]  ;;  %v108_v37 = vld [vmem:[%s2995_s20 + $0x30] sm:$0xff]  ;;  %v123_v39 = vld [vmem:[%s2995_s20 + $0xa8] sm:$0xff] }
  0x18   :  { %1727 = vmatprep.subr.mxu1 %v160_v22  ;;  %1685 = vmatprep.subr.mxu0 %v127_v23  ;;  %v156_v38 = vld [vmem:[%s2995_s20 + $0x1b0] sm:$0xff]  ;;  %v107_v41 = vld [vmem:[%s2995_s20 + $0x28] sm:$0xff]  ;;  %v122_v43 = vld [vmem:[%s2995_s20 + $0xa0] sm:$0xff] }
  0x19   :  { %1728 = vmatpush3.msra.mxu1 %v144_v24  ;;  %1686 = vmatpush3.msra.mxu0 %v111_v25  ;;  %v140_v40 = vld [vmem:[%s2995_s20 + $0x130] sm:$0xff]  ;;  %v155_v42 = vld [vmem:[%s2995_s20 + $0x1a8] sm:$0xff]  ;;  %v106_v45 = vld [vmem:[%s2995_s20 + $0x20] sm:$0xff] }
  0x1a   :  { %1729 = vmatprep.subr.mxu1 %v159_v26  ;;  %1687 = vmatprep.subr.mxu0 %v126_v27  ;;  %v139_v44 = vld [vmem:[%s2995_s20 + $0x128] sm:$0xff]  ;;  %v154_v46 = vld [vmem:[%s2995_s20 + $0x1a0] sm:$0xff]  ;;  %v121_v47 = vld [vmem:[%s2995_s20 + $0x98] sm:$0xff] }
  0x1b   :  { %1730 = vmatpush3.msra.mxu1 %v143_v28  ;;  %1688 = vmatpush3.msra.mxu0 %v110_v29  ;;  %v138_v48 = vld [vmem:[%s2995_s20 + $0x120] sm:$0xff]  ;;  %v105_v49 = vld [vmem:[%s2995_s20 + $0x18] sm:$0xff]  ;;  %v120_v51 = vld [vmem:[%s2995_s20 + $0x90] sm:$0xff] }
  0x1c   :  { %1731 = vmatprep.subr.mxu1 %v158_v30  ;;  %1689 = vmatprep.subr.mxu0 %v125_v31  ;;  %v153_v50 = vld [vmem:[%s2995_s20 + $0x198] sm:$0xff]  ;;  %v104_v53 = vld [vmem:[%s2995_s20 + $0x10] sm:$0xff]  ;;  %v119_v55 = vld [vmem:[%s2995_s20 + $0x88] sm:$0xff] }
  0x1d   :  { %1732 = vmatpush3.msra.mxu1 %v142_v32  ;;  %1690 = vmatpush3.msra.mxu0 %v109_v33  ;;  %v137_v52 = vld [vmem:[%s2995_s20 + $0x118] sm:$0xff]  ;;  %v152_v54 = vld [vmem:[%s2995_s20 + $0x190] sm:$0xff]  ;;  %v103_v57 = vld [vmem:[%s2995_s20 + $0x8] sm:$0xff] }
  0x1e   :  { %1733 = vmatprep.subr.mxu1 %v157_v34  ;;  %1691 = vmatprep.subr.mxu0 %v124_v35  ;;  %v136_v56 = vld [vmem:[%s2995_s20 + $0x110] sm:$0xff]  ;;  %v151_v58 = vld [vmem:[%s2995_s20 + $0x188] sm:$0xff]  ;;  %v118_v59 = vld [vmem:[%s2995_s20 + $0x80] sm:$0xff] }
  0x1f   :  { %1734 = vmatpush3.msra.mxu1 %v141_v36  ;;  %1692 = vmatpush3.msra.mxu0 %v108_v37  ;;  %v63_v60 = vld [vmem:[%s2996_s26 + $0x8] sm:$0xff]  ;;  %v102_v61 = vld [vmem:[%s2995_s20] sm:$0xff]  ;;  %v197_v1 = vld [vmem:[%s2995_s20 + $0x2f8] sm:$0xff] }
  0x20   :  { %1735 = vmatprep.subr.mxu1 %v156_v38  ;;  %1693 = vmatprep.subr.mxu0 %v123_v39  ;;  %v135_v62 = vld [vmem:[%s2995_s20 + $0x108] sm:$0xff]  ;;  %v62_v63 = vld [vmem:[%s2996_s26] sm:$0xff]  ;;  %v65_v3 = vld [vmem:[%s2996_s26 + $0x18] sm:$0xff] }
  0x21   :  { %1736 = vmatpush3.msra.mxu1 %v140_v40  ;;  %1694 = vmatpush3.msra.mxu0 %v107_v41  ;;  %v150_v0 = vld [vmem:[%s2995_s20 + $0x180] sm:$0xff]  ;;  %v181_v4 = vld [vmem:[%s2995_s20 + $0x278] sm:$0xff]  ;;  %v64_v5 = vld [vmem:[%s2996_s26 + $0x10] sm:$0xff] }
  0x22   :  { %1737 = vmatprep.subr.mxu1 %v155_v42  ;;  %1695 = vmatprep.subr.mxu0 %v122_v43  ;;  %v134_v2 = vld [vmem:[%s2995_s20 + $0x100] sm:$0xff]  ;;  %v196_v6 = vld [vmem:[%s2995_s20 + $0x2f0] sm:$0xff]  ;;  %v229_v7 = vld [vmem:[%s2995_s20 + $0x3f8] sm:$0xff] }
  0x23   :  { %1738 = vmatpush3.msra.mxu1 %v139_v44  ;;  %1696 = vmatpush3.msra.mxu0 %v106_v45  ;;  %v180_v8 = vld [vmem:[%s2995_s20 + $0x270] sm:$0xff]  ;;  %v213_v9 = vld [vmem:[%s2995_s20 + $0x378] sm:$0xff]  ;;  %v195_v10 = vld [vmem:[%s2995_s20 + $0x2e8] sm:$0xff] }
  0x24   :  { %1739 = vmatprep.subr.mxu1 %v154_v46  ;;  %1697 = vmatprep.subr.mxu0 %v121_v47  ;;  %v228_v11 = vld [vmem:[%s2995_s20 + $0x3f0] sm:$0xff]  ;;  %v179_v12 = vld [vmem:[%s2995_s20 + $0x268] sm:$0xff]  ;;  %v194_v14 = vld [vmem:[%s2995_s20 + $0x2e0] sm:$0xff] }
  0x25   :  { %1740 = vmatpush3.msra.mxu1 %v138_v48  ;;  %1698 = vmatpush3.msra.mxu0 %v105_v49  ;;  %v212_v13 = vld [vmem:[%s2995_s20 + $0x370] sm:$0xff]  ;;  %v227_v15 = vld [vmem:[%s2995_s20 + $0x3e8] sm:$0xff]  ;;  %v178_v16 = vld [vmem:[%s2995_s20 + $0x260] sm:$0xff] }
  0x26   :  { %1741 = vmatprep.subr.mxu1 %v153_v50  ;;  %1699 = vmatprep.subr.mxu0 %v120_v51  ;;  %v211_v17 = vld [vmem:[%s2995_s20 + $0x368] sm:$0xff]  ;;  %v193_v18 = vld [vmem:[%s2995_s20 + $0x2d8] sm:$0xff]  ;;  %v226_v19 = vld [vmem:[%s2995_s20 + $0x3e0] sm:$0xff] }
  0x27   :  { %1742 = vmatpush3.msra.mxu1 %v137_v52  ;;  %1700 = vmatpush3.msra.mxu0 %v104_v53  ;;  %v177_v20 = vld [vmem:[%s2995_s20 + $0x258] sm:$0xff]  ;;  %v210_v21 = vld [vmem:[%s2995_s20 + $0x360] sm:$0xff]  ;;  %v192_v22 = vld [vmem:[%s2995_s20 + $0x2d0] sm:$0xff] }
  0x28   :  { %1743 = vmatprep.subr.mxu1 %v152_v54  ;;  %1701 = vmatprep.subr.mxu0 %v119_v55  ;;  %v225_v23 = vld [vmem:[%s2995_s20 + $0x3d8] sm:$0xff]  ;;  %v176_v24 = vld [vmem:[%s2995_s20 + $0x250] sm:$0xff]  ;;  %v191_v26 = vld [vmem:[%s2995_s20 + $0x2c8] sm:$0xff] }
  0x29   :  { %1744 = vmatpush3.msra.mxu1 %v136_v56  ;;  %1702 = vmatpush3.msra.mxu0 %v103_v57  ;;  %v209_v25 = vld [vmem:[%s2995_s20 + $0x358] sm:$0xff]  ;;  %v224_v27 = vld [vmem:[%s2995_s20 + $0x3d0] sm:$0xff]  ;;  %v175_v28 = vld [vmem:[%s2995_s20 + $0x248] sm:$0xff] }
  0x2a   :  { %1745 = vmatprep.subr.mxu1 %v151_v58  ;;  %1703 = vmatprep.subr.mxu0 %v118_v59  ;;  %v208_v29 = vld [vmem:[%s2995_s20 + $0x350] sm:$0xff]  ;;  %v190_v30 = vld [vmem:[%s2995_s20 + $0x2c0] sm:$0xff]  ;;  %v223_v31 = vld [vmem:[%s2995_s20 + $0x3c8] sm:$0xff] }
  0x2b   :  { %333 = vmatprep.mubr.f32.mxu0 %v63_v60  ;;  %1704 = vmatpush3.msra.mxu0 %v102_v61  ;;  %v174_v32 = vld [vmem:[%s2995_s20 + $0x240] sm:$0xff]  ;;  %v207_v33 = vld [vmem:[%s2995_s20 + $0x348] sm:$0xff]  ;;  %v189_v34 = vld [vmem:[%s2995_s20 + $0x2b8] sm:$0xff] }
  0x2c   :  { %1746 = vmatpush3.msra.mxu1 %v135_v62  ;;  %334 = vmatmul.mubr.f32.vlgmr.msra.gmra.mxu0 %v62_v63  ;;  %v222_v35 = vld [vmem:[%s2995_s20 + $0x3c0] sm:$0xff]  ;;  %v173_v36 = vld [vmem:[%s2995_s20 + $0x238] sm:$0xff]  ;;  %v188_v39 = vld [vmem:[%s2995_s20 + $0x2b0] sm:$0xff] }
  0x2d   :  { %1747 = vmatprep.subr.mxu1 %v150_v0  ;;  %1761 = vmatprep.subr.mxu0 %v197_v1  ;;  %v206_v37 = vld [vmem:[%s2995_s20 + $0x340] sm:$0xff]  ;;  %v73_v38 = vld [vmem:[%s2996_s26 + $0x58] sm:$0xff]  ;;  %v72_v41 = vld [vmem:[%s2996_s26 + $0x50] sm:$0xff] }
  0x2e   :  { %1748 = vmatpush3.msra.mxu1 %v134_v2  ;;  %418 = vmatprep.mubr.f32.mxu1 %v65_v3  ;;  %v221_v40 = vld [vmem:[%s2995_s20 + $0x3b8] sm:$0xff]  ;;  %v172_v43 = vld [vmem:[%s2995_s20 + $0x230] sm:$0xff]  ;;  %v75_v44 = vld [vmem:[%s2996_s26 + $0x68] sm:$0xff] }
  0x2f   :  { %1762 = vmatpush3.msra.mxu0 %v181_v4  ;;  %419 = vmatmul.mubr.f32.vlgmr.msra.gmra.mxu1 %v64_v5  ;;  %v205_v42 = vld [vmem:[%s2995_s20 + $0x338] sm:$0xff]  ;;  %v187_v45 = vld [vmem:[%s2995_s20 + $0x2a8] sm:$0xff]  ;;  %v220_v46 = vld [vmem:[%s2995_s20 + $0x3b0] sm:$0xff] }
  0x30   :  { %1763 = vmatprep.subr.mxu0 %v196_v6  ;;  %1805 = vmatprep.subr.mxu1 %v229_v7  ;;  %v74_v47 = vld [vmem:[%s2996_s26 + $0x60] sm:$0xff]  ;;  %v171_v48 = vld [vmem:[%s2995_s20 + $0x228] sm:$0xff]  ;;  %v204_v49 = vld [vmem:[%s2995_s20 + $0x330] sm:$0xff] }
  0x31   :  { %1764 = vmatpush3.msra.mxu0 %v180_v8  ;;  %1806 = vmatpush3.msra.mxu1 %v213_v9  ;;  %v83_v50 = vld [vmem:[%s2996_s26 + $0xa8] sm:$0xff]  ;;  %v186_v51 = vld [vmem:[%s2995_s20 + $0x2a0] sm:$0xff]  ;;  %v85_v56 = vld [vmem:[%s2996_s26 + $0xb8] sm:$0xff] }
  0x32   :  { %1765 = vmatprep.subr.mxu0 %v195_v10  ;;  %1807 = vmatprep.subr.mxu1 %v228_v11  ;;  %v219_v52 = vld [vmem:[%s2995_s20 + $0x3a8] sm:$0xff]  ;;  %v82_v53 = vld [vmem:[%s2996_s26 + $0xa0] sm:$0xff]  ;;  %v185_v57 = vld [vmem:[%s2995_s20 + $0x298] sm:$0xff] }
  0x33   :  { %1766 = vmatpush3.msra.mxu0 %v179_v12  ;;  %1808 = vmatpush3.msra.mxu1 %v212_v13  ;;  %v203_v54 = vld [vmem:[%s2995_s20 + $0x328] sm:$0xff]  ;;  %v170_v55 = vld [vmem:[%s2995_s20 + $0x220] sm:$0xff]  ;;  %v84_v59 = vld [vmem:[%s2996_s26 + $0xb0] sm:$0xff] }
  0x34   :  { %1767 = vmatprep.subr.mxu0 %v194_v14  ;;  %1809 = vmatprep.subr.mxu1 %v227_v15  ;;  %v218_v58 = vld [vmem:[%s2995_s20 + $0x3a0] sm:$0xff]  ;;  %v169_v60 = vld [vmem:[%s2995_s20 + $0x218] sm:$0xff]  ;;  %v184_v63 = vld [vmem:[%s2995_s20 + $0x290] sm:$0xff] }
  0x35   :  { %1768 = vmatpush3.msra.mxu0 %v178_v16  ;;  %1810 = vmatpush3.msra.mxu1 %v211_v17  ;;  %v202_v61 = vld [vmem:[%s2995_s20 + $0x320] sm:$0xff]  ;;  %v93_v62 = vld [vmem:[%s2996_s26 + $0xf8] sm:$0xff]  ;;  %v92_v1 = vld [vmem:[%s2996_s26 + $0xf0] sm:$0xff] }
  0x36   :  { %1769 = vmatprep.subr.mxu0 %v193_v18  ;;  %1811 = vmatprep.subr.mxu1 %v226_v19  ;;  %v217_v0 = vld [vmem:[%s2995_s20 + $0x398] sm:$0xff]  ;;  %v168_v3 = vld [vmem:[%s2995_s20 + $0x210] sm:$0xff]  ;;  %v95_v4 = vld [vmem:[%s2996_s26 + $0x108] sm:$0xff] }
  0x37   :  { %1770 = vmatpush3.msra.mxu0 %v177_v20  ;;  %1812 = vmatpush3.msra.mxu1 %v210_v21  ;;  %v201_v2 = vld [vmem:[%s2995_s20 + $0x318] sm:$0xff]  ;;  %v183_v5 = vld [vmem:[%s2995_s20 + $0x288] sm:$0xff]  ;;  %v216_v6 = vld [vmem:[%s2995_s20 + $0x390] sm:$0xff]  ;;  %v1985_v21 = vmov 0.0  }
  0x38   :  { %1771 = vmatprep.subr.mxu0 %v192_v22  ;;  %1813 = vmatprep.subr.mxu1 %v225_v23  ;;  %v94_v7 = vld [vmem:[%s2996_s26 + $0x100] sm:$0xff]  ;;  %v167_v8 = vld [vmem:[%s2995_s20 + $0x208] sm:$0xff]  ;;  %v200_v9 = vld [vmem:[%s2995_s20 + $0x310] sm:$0xff] }
  0x39   :  { %1772 = vmatpush3.msra.mxu0 %v176_v24  ;;  %1814 = vmatpush3.msra.mxu1 %v209_v25  ;;  %v182_v10 = vld [vmem:[%s2995_s20 + $0x280] sm:$0xff]  ;;  %v215_v11 = vld [vmem:[%s2995_s20 + $0x388] sm:$0xff]  ;;  %v69_v18 = vld [vmem:[%s2996_s26 + $0x38] sm:$0xff] }
  0x3a   :  { %1773 = vmatprep.subr.mxu0 %v191_v26  ;;  %1815 = vmatprep.subr.mxu1 %v224_v27  ;;  %v166_v12 = vld [vmem:[%s2995_s20 + $0x200] sm:$0xff]  ;;  %v67_v13 = vld [vmem:[%s2996_s26 + $0x28] sm:$0xff]  ;;  %v245_v19 = vld [vmem:[%s2995_s20 + $0x478] sm:$0xff] }
  0x3b   :  { %1774 = vmatpush3.msra.mxu0 %v175_v28  ;;  %1816 = vmatpush3.msra.mxu1 %v208_v29  ;;  %v199_v14 = vld [vmem:[%s2995_s20 + $0x308] sm:$0xff]  ;;  %v66_v15 = vld [vmem:[%s2996_s26 + $0x20] sm:$0xff]  ;;  %v68_v20 = vld [vmem:[%s2996_s26 + $0x30] sm:$0xff] }
  0x3c   :  { %1775 = vmatprep.subr.mxu0 %v190_v30  ;;  %1817 = vmatprep.subr.mxu1 %v223_v31  ;;  %v214_v16 = vld [vmem:[%s2995_s20 + $0x380] sm:$0xff]  ;;  %v77_v22 = vld [vmem:[%s2996_s26 + $0x78] sm:$0xff]  ;;  %v244_v23 = vld [vmem:[%s2995_s20 + $0x470] sm:$0xff] }
  0x3d   :  { %1776 = vmatpush3.msra.mxu0 %v174_v32  ;;  %1818 = vmatpush3.msra.mxu1 %v207_v33  ;;  %v198_v17 = vld [vmem:[%s2995_s20 + $0x300] sm:$0xff]  ;;  %v76_v24 = vld [vmem:[%s2996_s26 + $0x70] sm:$0xff]  ;;  %v79_v25 = vld [vmem:[%s2996_s26 + $0x88] sm:$0xff] }
  0x3e   :  { %1777 = vmatprep.subr.mxu0 %v189_v34  ;;  %1819 = vmatprep.subr.mxu1 %v222_v35  ;;  %v243_v26 = vld [vmem:[%s2995_s20 + $0x468] sm:$0xff]  ;;  %v78_v27 = vld [vmem:[%s2996_s26 + $0x80] sm:$0xff]  ;;  %v89_v31 = vld [vmem:[%s2996_s26 + $0xd8] sm:$0xff] }
  0x3f   :  { %1778 = vmatpush3.msra.mxu0 %v173_v36  ;;  %1820 = vmatpush3.msra.mxu1 %v206_v37  ;;  %v87_v28 = vld [vmem:[%s2996_s26 + $0xc8] sm:$0xff]  ;;  %v242_v29 = vld [vmem:[%s2995_s20 + $0x460] sm:$0xff]  ;;  %v241_v32 = vld [vmem:[%s2995_s20 + $0x458] sm:$0xff] }
  0x40   :  { %338 = vmatprep.mubr.f32.mxu0 %v73_v38  ;;  %1779 = vmatprep.subr.mxu0 %v188_v39  ;;  %v86_v30 = vld [vmem:[%s2996_s26 + $0xc0] sm:$0xff]  ;;  %v88_v33 = vld [vmem:[%s2996_s26 + $0xd0] sm:$0xff]  ;;  %v97_v34 = vld [vmem:[%s2996_s26 + $0x118] sm:$0xff] }
  0x41   :  { %1821 = vmatprep.subr.mxu1 %v221_v40  ;;  %339 = vmatmul.mubr.f32.gmra.mxu0 %v72_v41  ;;  %v240_v35 = vld [vmem:[%s2995_s20 + $0x450] sm:$0xff]  ;;  %v99_v37 = vld [vmem:[%s2996_s26 + $0x128] sm:$0xff]  ;;  %v98_v39 = vld [vmem:[%s2996_s26 + $0x120] sm:$0xff] }
  0x42   :  { %1822 = vmatpush3.msra.mxu1 %v205_v42  ;;  %1780 = vmatpush3.msra.mxu0 %v172_v43  ;;  %v96_v36 = vld [vmem:[%s2996_s26 + $0x110] sm:$0xff]  ;;  %v239_v38 = vld [vmem:[%s2995_s20 + $0x448] sm:$0xff]  ;;  %v238_v40 = vld [vmem:[%s2995_s20 + $0x440] sm:$0xff] }
  0x43   :  { %423 = vmatprep.mubr.f32.mxu1 %v75_v44  ;;  %1781 = vmatprep.subr.mxu0 %v187_v45  ;;  %v71_v41 = vld [vmem:[%s2996_s26 + $0x48] sm:$0xff]  ;;  %v237_v42 = vld [vmem:[%s2995_s20 + $0x438] sm:$0xff]  ;;  %v236_v43 = vld [vmem:[%s2995_s20 + $0x430] sm:$0xff] }
  0x44   :  { %1823 = vmatprep.subr.mxu1 %v220_v46  ;;  %424 = vmatmul.mubr.f32.gmra.mxu1 %v74_v47  ;;  %v235_v44 = vld [vmem:[%s2995_s20 + $0x428] sm:$0xff]  ;;  %v234_v45 = vld [vmem:[%s2995_s20 + $0x420] sm:$0xff]  ;;  %v233_v46 = vld [vmem:[%s2995_s20 + $0x418] sm:$0xff] }
  0x45   :  { %1782 = vmatpush3.msra.mxu0 %v171_v48  ;;  %1824 = vmatpush3.msra.mxu1 %v204_v49  ;;  %v232_v47 = vld [vmem:[%s2995_s20 + $0x410] sm:$0xff]  ;;  %v231_v48 = vld [vmem:[%s2995_s20 + $0x408] sm:$0xff]  ;;  %v230_v49 = vld [vmem:[%s2995_s20 + $0x400] sm:$0xff] }
  0x46   :  { %343 = vmatprep.mubr.f32.mxu0 %v83_v50  ;;  %1783 = vmatprep.subr.mxu0 %v186_v51  ;;  %v248_v50 = vld [vmem:[%s2995_s20 + $0x490] sm:$0xff]  ;;  %v247_v51 = vld [vmem:[%s2995_s20 + $0x488] sm:$0xff] }
  0x47   :  { %1825 = vmatprep.subr.mxu1 %v219_v52  ;;  %344 = vmatmul.mubr.f32.gmra.mxu0 %v82_v53  ;;  %v246_v52 = vld [vmem:[%s2995_s20 + $0x480] sm:$0xff] }
  0x48   :  { %1826 = vmatpush3.msra.mxu1 %v203_v54  ;;  %1784 = vmatpush3.msra.mxu0 %v170_v55  ;;  %v70_v53 = vld [vmem:[%s2996_s26 + $0x40] sm:$0xff]  ;;  %v81_v54 = vld [vmem:[%s2996_s26 + $0x98] sm:$0xff]  ;;  %v80_v55 = vld [vmem:[%s2996_s26 + $0x90] sm:$0xff] }
  0x49   :  { %428 = vmatprep.mubr.f32.mxu1 %v85_v56  ;;  %1785 = vmatprep.subr.mxu0 %v185_v57  ;;  %v91_v56 = vld [vmem:[%s2996_s26 + $0xe8] sm:$0xff]  ;;  %v90_v57 = vld [vmem:[%s2996_s26 + $0xe0] sm:$0xff] }
  0x4a   :  { %1827 = vmatprep.subr.mxu1 %v218_v58  ;;  %429 = vmatmul.mubr.f32.gmra.mxu1 %v84_v59  ;;  %v101_v58 = vld [vmem:[%s2996_s26 + $0x138] sm:$0xff]  ;;  %v100_v59 = vld [vmem:[%s2996_s26 + $0x130] sm:$0xff] }
  0x4b   :  { %1786 = vmatpush3.msra.mxu0 %v169_v60  ;;  %1828 = vmatpush3.msra.mxu1 %v202_v61  ;;  %v701_v60 = vld [vmem:[%s2997_s0 + $0x18] sm:$0xff]  ;;  %v700_v61 = vld [vmem:[%s2997_s0 + $0x10] sm:$0xff] }
  0x4c   :  { %348 = vmatprep.mubr.f32.mxu0 %v93_v62  ;;  %1787 = vmatprep.subr.mxu0 %v184_v63  ;;  %v699_v62 = vld [vmem:[%s2997_s0 + $0x8] sm:$0xff]  ;;  %v698_v63 = vld [vmem:[%s2997_s0] sm:$0xff] }
  0x4d   :  { %1829 = vmatprep.subr.mxu1 %v217_v0  ;;  %349 = vmatmul.mubr.f32.gmra.mxu0 %v92_v1 }
  0x4e   :  { %1830 = vmatpush3.msra.mxu1 %v201_v2  ;;  %1788 = vmatpush3.msra.mxu0 %v168_v3 }
  0x4f   :  { %433 = vmatprep.mubr.f32.mxu1 %v95_v4  ;;  %1789 = vmatprep.subr.mxu0 %v183_v5 }
  0x50   :  { %1831 = vmatprep.subr.mxu1 %v216_v6  ;;  %434 = vmatmul.mubr.f32.gmra.mxu1 %v94_v7 }
  0x51   :  { %1790 = vmatpush3.msra.mxu0 %v167_v8  ;;  %1832 = vmatpush3.msra.mxu1 %v200_v9 }
  0x52   :  { %1791 = vmatprep.subr.mxu0 %v182_v10  ;;  %1833 = vmatprep.subr.mxu1 %v215_v11 }
  0x53   :  { %1792 = vmatpush3.msra.mxu0 %v166_v12  ;;  %503 = vmatprep.mubr.f32.mxu0 %v67_v13 }
  0x54   :  { %1834 = vmatpush3.msra.mxu1 %v199_v14  ;;  %504 = vmatmul.mubr.f32.vlgmr.msra.gmra.mxu0 %v66_v15 }
  0x55   :  { %1835 = vmatprep.subr.mxu1 %v214_v16  ;;  %609 = vmatprep.subr.mxu0 %v1985_v21 }
  0x56   :  { %1836 = vmatpush3.msra.mxu1 %v198_v17  ;;  %588 = vmatprep.mubr.f32.mxu1 %v69_v18 }
  0x57   :  { %610 = vmatpush1.msra.mxu0 %v245_v19  ;;  %589 = vmatmul.mubr.f32.vlgmr.msra.gmra.mxu1 %v68_v20 }
  0x58   :  { %611 = vmatprep.subr.mxu0 %v1985_v21  ;;  %508 = vmatprep.mubr.f32.mxu0 %v77_v22 }
  0x59   :  { %612 = vmatpush1.msra.mxu0 %v244_v23  ;;  %593 = vmatprep.mubr.f32.mxu1 %v79_v25  ;;  %v1643_v25 = vld [vmem:[%s2998_s27] ss:$0 sm:$0xff] }
  0x5a   :  { %509 = vmatmul.mubr.f32.gmra.mxu0 %v76_v24  ;;  %613 = vmatprep.subr.mxu0 %v1985_v21 }
  0x5b   :  { %614 = vmatpush1.msra.mxu0 %v243_v26  ;;  %594 = vmatmul.mubr.f32.gmra.mxu1 %v78_v27 }
  0x5c   :  { %615 = vmatprep.subr.mxu0 %v1985_v21  ;;  %513 = vmatprep.mubr.f32.mxu0 %v87_v28 }
  0x5d   :  { %616 = vmatpush1.msra.mxu0 %v242_v29  ;;  %598 = vmatprep.mubr.f32.mxu1 %v89_v31 }
  0x5e   :  { %514 = vmatmul.mubr.f32.gmra.mxu0 %v86_v30  ;;  %617 = vmatprep.subr.mxu0 %v1985_v21 }
  0x5f   :  { %618 = vmatpush1.msra.mxu0 %v241_v32  ;;  %599 = vmatmul.mubr.f32.gmra.mxu1 %v88_v33 }
  0x60   :  { %619 = vmatprep.subr.mxu0 %v1985_v21  ;;  %518 = vmatprep.mubr.f32.mxu0 %v97_v34 }
  0x61   :  { %620 = vmatpush1.msra.mxu0 %v240_v35  ;;  %603 = vmatprep.mubr.f32.mxu1 %v99_v37 }
  0x62   :  { %519 = vmatmul.mubr.f32.gmra.mxu0 %v96_v36  ;;  %621 = vmatprep.subr.mxu0 %v1985_v21 }
  0x63   :  { %622 = vmatpush1.msra.mxu0 %v239_v38  ;;  %604 = vmatmul.mubr.f32.gmra.mxu1 %v98_v39 }
  0x64   :  { %623 = vmatprep.subr.mxu0 %v1985_v21  ;;  %1644 = vmatprep.mubr.msk.f32.mxu0 %vm256_vm0, %v71_v41 }
  0x65   :  { %624 = vmatpush1.msra.mxu0 %v238_v40  ;;  %1892 = vmatprep.subr.mxu1 %v701_v60 }
  0x66   :  { %625 = vmatprep.subr.mxu0 %v1985_v21  ;;  %1893 = vmatpush3.msra.mxu1 %v701_v60 }
  0x67   :  { %626 = vmatpush1.msra.mxu0 %v237_v42  ;;  %1894 = vmatprep.subr.mxu1 %v700_v61 }
  0x68   :  { %627 = vmatprep.subr.mxu0 %v1985_v21  ;;  %1895 = vmatpush3.msra.mxu1 %v700_v61 }
  0x69   :  { %628 = vmatpush1.msra.mxu0 %v236_v43  ;;  %1896 = vmatprep.subr.mxu1 %v699_v62 }
  0x6a   :  { %629 = vmatprep.subr.mxu0 %v1985_v21  ;;  %1897 = vmatpush3.msra.mxu1 %v699_v62 }
  0x6b   :  { %630 = vmatpush1.msra.mxu0 %v235_v44  ;;  %1898 = vmatprep.subr.mxu1 %v698_v63 }
  0x6c   :  { %631 = vmatprep.subr.mxu0 %v1985_v21  ;;  %1899 = vmatpush3.msra.mxu1 %v698_v63 }
  0x6d   :  { %632 = vmatpush1.msra.mxu0 %v234_v45  ;;  %866 = vmatprep.subr.mxu1 %v1985_v21 }
  0x6e   :  { %633 = vmatprep.subr.mxu0 %v1985_v21 }
  0x6f   :  { %634 = vmatpush1.msra.mxu0 %v233_v46 }
  0x70   :  { %635 = vmatprep.subr.mxu0 %v1985_v21 }
  0x71   :  { %636 = vmatpush1.msra.mxu0 %v232_v47 }
  0x72   :  { %637 = vmatprep.subr.mxu0 %v1985_v21 }
  0x73   :  { %638 = vmatpush1.msra.mxu0 %v231_v48 }
  0x74   :  { %639 = vmatprep.subr.mxu0 %v1985_v21 }
  0x75   :  { %640 = vmatpush1.msra.mxu0 %v230_v49 }
  0x76   :  { %667 = vmatprep.subr.mxu0 %v1985_v21 }
  0x77   :  { %668 = vmatpush2.msra.mxu0 %v248_v50 }
  0x78   :  { %669 = vmatprep.subr.mxu0 %v1985_v21 }
  0x79   :  { %670 = vmatpush2.msra.mxu0 %v247_v51 }
  0x7a   :  { %671 = vmatprep.subr.mxu0 %v1985_v21 }
  0x7b   :  { %672 = vmatpush2.msra.mxu0 %v246_v52 }
  0x7c   :  { %674 = vmatmul.mubr.f32.vlgmr.msra.gmra.mxu0 %v70_v53 }
  0x7d   :  { %1645 = vmatprep.mubr.msk.f32.mxu0 %vm256_vm0, %v81_v54 }
  0x80   :  { %679 = vmatmul.mubr.f32.gmra.mxu0 %v80_v55 }
  0x81   :  { %1646 = vmatprep.mubr.msk.f32.mxu0 %vm256_vm0, %v91_v56 }
  0x84   :  { %684 = vmatmul.mubr.f32.gmra.mxu0 %v90_v57 }
  0x85   :  { %1647 = vmatprep.mubr.msk.f32.mxu0 %vm256_vm0, %v101_v58 }
  0x88   :  { %689 = vmatmul.mubr.f32.gmra.mxu0 %v100_v59 }
  0xec   :  { %v1705_v0 = vpop.f32.mrf.mxu0 }
  0xee   :  { %v1706_v1 = vpop.f32.mrf.mxu0 }
  0xef   :  { %v1749_v2 = vpop.f32.mrf.mxu1  ;;  %v1707_v24 = vadd.f32 %v1706_v1, %v1705_v0 }
  0xf1   :  { %v1750_v4 = vpop.f32.mrf.mxu1  ;;  %v336_v29 = vadd.f32 %v1707_v24, %v1643_v25  ;;  %v808_v24 = vld [vmem:[%s2973_s1 + $0x8] sm:$0xff] }
  0xf2   :  { %v1751_v30 = vadd.f32 %v1750_v4, %v1749_v2 }
  0xf4   :  { %v421_v36 = vadd.f32 %v1751_v30, %v336_v29  ;;  %v821_v29 = vld [vmem:[%s2972_s6 + $0x30] sm:$0xff]  ;;  %v820_v30 = vld [vmem:[%s2972_s6 + $0x28] sm:$0xff] }
 0x101   :  { %v1708_v3 = vpop.f32.mrf.mxu0 }
 0x103   :  { %v1709_v5 = vpop.f32.mrf.mxu0 }
 0x104   :  { %v1752_v6 = vpop.f32.mrf.mxu1  ;;  %v1710_v27 = vadd.f32 %v1709_v5, %v1708_v3 }
 0x106   :  { %v1753_v8 = vpop.f32.mrf.mxu1  ;;  %v341_v33 = vadd.f32 %v1710_v27, %v1643_v25  ;;  %v823_v27 = vld [vmem:[%s2972_s6 + $0x40] sm:$0xff] }
 0x107   :  { %v1711_v7 = vpop.f32.mrf.mxu0  ;;  %v1754_v34 = vadd.f32 %v1753_v8, %v1752_v6 }
 0x109   :  { %v1712_v9 = vpop.f32.mrf.mxu0  ;;  %v426_v42 = vadd.f32 %v1754_v34, %v341_v33  ;;  %v817_v33 = vld [vmem:[%s2972_s6 + $0x10] sm:$0xff]  ;;  %v816_v34 = vld [vmem:[%s2972_s6 + $0x8] sm:$0xff] }
 0x10a   :  { %v1755_v10 = vpop.f32.mrf.mxu1  ;;  %v1713_v37 = vadd.f32 %v1712_v9, %v1711_v7  ;;  %v830_v9 = vld [vmem:[%s2972_s6 + $0x78] sm:$0xff] }
 0x10c   :  { %v1756_v12 = vpop.f32.mrf.mxu1  ;;  %v346_v44 = vadd.f32 %v1713_v37, %v1643_v25  ;;  %v840_v37 = vld [vmem:[%s2972_s6 + $0xc8] sm:$0xff] }
 0x10d   :  { %v1714_v11 = vpop.f32.mrf.mxu0  ;;  %v1757_v45 = vadd.f32 %v1756_v12, %v1755_v10  ;;  %v829_v12 = vld [vmem:[%s2972_s6 + $0x70] sm:$0xff] }
 0x10f   :  { %v1715_v13 = vpop.f32.mrf.mxu0  ;;  %v431_v54 = vadd.f32 %v1757_v45, %v346_v44  ;;  %v833_v44 = vld [vmem:[%s2972_s6 + $0x90] sm:$0xff]  ;;  %v832_v45 = vld [vmem:[%s2972_s6 + $0x88] sm:$0xff] }
 0x110   :  { %v1758_v14 = vpop.f32.mrf.mxu1  ;;  %v1716_v46 = vadd.f32 %v1715_v13, %v1714_v11 }
 0x112   :  { %v1759_v16 = vpop.f32.mrf.mxu1  ;;  %v351_v55 = vadd.f32 %v1716_v46, %v1643_v25  ;;  %v825_v25 = vld [vmem:[%s2972_s6 + $0x50] sm:$0xff]  ;;  %v831_v46 = vld [vmem:[%s2972_s6 + $0x80] sm:$0xff] }
 0x113   :  { %v1760_v56 = vadd.f32 %v1759_v16, %v1758_v14  ;;  %v828_v16 = vld [vmem:[%s2972_s6 + $0x68] sm:$0xff] }
 0x114   :  { %v1793_v15 = vpop.f32.mrf.mxu0 }
 0x115   :  { %v436_v2 = vadd.f32 %v1760_v56, %v351_v55  ;;  %v1085_v55 = vld [vmem:[%s2974_s10 + $0x10] sm:$0xff]  ;;  %v1084_v56 = vld [vmem:[%s2974_s10 + $0x8] sm:$0xff] }
 0x116   :  { %v1794_v17 = vpop.f32.mrf.mxu0 }
 0x117   :  { %v1837_v18 = vpop.f32.mrf.mxu1  ;;  %v1795_v32 = vadd.f32 %v1794_v17, %v1793_v15 }
 0x119   :  { %v1838_v20 = vpop.f32.mrf.mxu1  ;;  %v506_v40 = vadd.f32 %v1795_v32, %v421_v36  ;;  %v818_v32 = vld [vmem:[%s2972_s6 + $0x18] sm:$0xff]  ;;  %v841_v36 = vld [vmem:[%s2972_s6 + $0xd0] sm:$0x3] }
 0x11a   :  { %v1796_v19 = vpop.f32.mrf.mxu0  ;;  %v1839_v41 = vadd.f32 %v1838_v20, %v1837_v18 }
 0x11b   :  { %v1840_v23 = vpop.f32.mrf.mxu1 }
 0x11c   :  { %v1797_v22 = vpop.f32.mrf.mxu0  ;;  %v591_v51 = vadd.f32 %v1839_v41, %v506_v40  ;;  %v837_v40 = vld [vmem:[%s2972_s6 + $0xb0] sm:$0xff]  ;;  %v836_v41 = vld [vmem:[%s2972_s6 + $0xa8] sm:$0xff] }
 0x11d   :  { %v1841_v28 = vpop.f32.mrf.mxu1  ;;  %v1798_v38 = vadd.f32 %v1797_v22, %v1796_v19  ;;  %v827_v19 = vld [vmem:[%s2972_s6 + $0x60] sm:$0xff] }
 0x11e   :  { %v1799_v26 = vpop.f32.mrf.mxu0  ;;  %v1842_v48 = vadd.f32 %v1841_v28, %v1840_v23  ;;  %v826_v23 = vld [vmem:[%s2972_s6 + $0x58] sm:$0xff] }
 0x11f   :  { %v1843_v35 = vpop.f32.mrf.mxu1  ;;  %v511_v47 = vadd.f32 %v1798_v38, %v426_v42  ;;  %v822_v28 = vld [vmem:[%s2972_s6 + $0x38] sm:$0xff]  ;;  %v839_v38 = vld [vmem:[%s2972_s6 + $0xc0] sm:$0xff] }
 0x120   :  { %v1800_v31 = vpop.f32.mrf.mxu0  ;;  %v835_v42 = vld [vmem:[%s2972_s6 + $0xa0] sm:$0xff] }
 0x121   :  { %v1844_v43 = vpop.f32.mrf.mxu1  ;;  %v1801_v50 = vadd.f32 %v1800_v31, %v1799_v26  ;;  %v596_v59 = vadd.f32 %v1842_v48, %v511_v47  ;;  %v824_v26 = vld [vmem:[%s2972_s6 + $0x48] sm:$0xff]  ;;  %v819_v31 = vld [vmem:[%s2972_s6 + $0x20] sm:$0xff]  ;;  %v810_v48 = vld [vmem:[%s2973_s1 + $0x18] sm:$0xff] }
 0x122   :  { %v1802_v39 = vpop.f32.mrf.mxu0  ;;  %v1845_v61 = vadd.f32 %v1844_v43, %v1843_v35  ;;  %v815_v35 = vld [vmem:[%s2972_s6] sm:$0xff]  ;;  %v834_v43 = vld [vmem:[%s2972_s6 + $0x98] sm:$0xff] }
 0x123   :  { %v1846_v52 = vpop.f32.mrf.mxu1  ;;  %v516_v60 = vadd.f32 %v1801_v50, %v431_v54  ;;  %v807_v47 = vld [vmem:[%s2973_s1] sm:$0xff]  ;;  %v812_v50 = vld [vmem:[%s2973_s1 + $0x28] sm:$0xff]  ;;  %v1086_v54 = vld [vmem:[%s2974_s10 + $0x18] sm:$0xff] }
 0x124   :  { %v1803_v49 = vpop.f32.mrf.mxu0 }
 0x125   :  { %v1804_v62 = vadd.f32 %v1803_v49, %v1802_v39  ;;  %v1847_v0 = vpop.f32.mrf.mxu1  ;;  %v601_v8 = vadd.f32 %v1845_v61, %v516_v60  ;;  %v838_v39 = vld [vmem:[%s2972_s6 + $0xb8] sm:$0xff]  ;;  %v809_v49 = vld [vmem:[%s2973_s1 + $0x10] sm:$0xff]  ;;  %v1648_v61 = vld [vmem:[%s2976_s5] ss:$0 sm:$0xff] }
 0x126   :  { %v1848_v6 = vadd.f32 %v1847_v0, %v1846_v52  ;;  %v814_v52 = vld [vmem:[%s2973_s1 + $0x38] sm:$0xff] }
 0x127   :  { %v521_v5 = vadd.f32 %v1804_v62, %v436_v2 }
 0x129   :  { %v606_v15 = vadd.f32 %v1848_v6, %v521_v5 }
 0x13c   :  { %v675_v53 = vpop.f32.mrf.mxu0 }
 0x13d   :  { %v676_v57 = vadd.f32 %v675_v53, %v591_v51  ;;  %v811_v51 = vld [vmem:[%s2973_s1 + $0x20] sm:$0xff]  ;;  %v813_v53 = vld [vmem:[%s2973_s1 + $0x30] sm:$0xff] }
 0x13e   :  { %v677_v58 = vpop.f32.mrf.mxu0 }
 0x13f   :  { %v694_v63 = vmax.f32 %v676_v57, 0.0  ;;  %v1083_v57 = vld [vmem:[%s2974_s10] sm:$0xff]  ;;  %v956_v58 = vld [vmem:[%s2975_s8 + $0x8] sm:$0xff] }
 0x140   :  { %v680_v1 = vpop.f32.mrf.mxu0  ;;  %1906 = vmatprep.subr.mxu0 %v956_v58 }
 0x141   :  { %v681_v3 = vadd.f32 %v680_v1, %v596_v59  ;;  %1900 = vmatprep.mubr.msk.f32.mxu1 %vm709_vm1, %v694_v63  ;;  %1907 = vmatpush3.msra.mxu0 %v956_v58  ;;  %v955_v59 = vld [vmem:[%s2975_s8] sm:$0xff] }
 0x142   :  { %v682_v4 = vpop.f32.mrf.mxu0  ;;  %1908 = vmatprep.subr.mxu0 %v955_v59 }
 0x143   :  { %v695_v7 = vmax.f32 %v681_v3, 0.0  ;;  %1909 = vmatpush3.msra.mxu0 %v955_v59 }
 0x144   :  { %v685_v10 = vpop.f32.mrf.mxu0  ;;  %1927 = vmatprep.subr.mxu0 %v1985_v21 }
 0x145   :  { %v686_v11 = vadd.f32 %v685_v10, %v601_v8  ;;  %1901 = vmatmul.mubr.msk.f32.vlgmr.msra.gmra.mxu1 %vm709_vm1, %v695_v7 }
 0x146   :  { %867 = vmatpush1.msra.mxu1 %v830_v9  ;;  %v687_v13 = vpop.f32.mrf.mxu0 }
 0x147   :  { %v696_v14 = vmax.f32 %v686_v11, 0.0  ;;  %868 = vmatprep.subr.mxu1 %v1985_v21 }
 0x148   :  { %869 = vmatpush1.msra.mxu1 %v829_v12  ;;  %v690_v17 = vpop.f32.mrf.mxu0  ;;  %v1653_v12 = vld [vmem:[%s2977_s7] ss:$0 sm:$0xff] }
 0x149   :  { %v691_v18 = vadd.f32 %v690_v17, %v606_v15  ;;  %870 = vmatprep.subr.mxu1 %v1985_v21  ;;  %1903 = vmatprep.mubr.msk.f32.mxu1 %vm709_vm1, %v696_v14 }
 0x14a   :  { %871 = vmatpush1.msra.mxu1 %v828_v16  ;;  %v692_v20 = vpop.f32.mrf.mxu0 }
 0x14b   :  { %v697_v22 = vmax.f32 %v691_v18, 0.0  ;;  %872 = vmatprep.subr.mxu1 %v1985_v21 }
 0x14c   :  { %873 = vmatpush1.msra.mxu1 %v827_v19 }
 0x14d   :  { %874 = vmatprep.subr.mxu1 %v1985_v21  ;;  %1904 = vmatmul.mubr.msk.f32.gmra.mxu1 %vm709_vm1, %v697_v22  ;;  %v1170_v22 = vld [vmem:[%s2978_s11 + $0x18] sm:$0xff] }
 0x14e   :  { %875 = vmatpush1.msra.mxu1 %v826_v23  ;;  %1655 = vmatprep.mubr.msk.f32.mxu1 %vm849_vm2, %v808_v24 }
 0x14f   :  { %876 = vmatprep.subr.mxu1 %v1985_v21 }
 0x150   :  { %877 = vmatpush1.msra.mxu1 %v825_v25  ;;  %v1169_v25 = vld [vmem:[%s2978_s11 + $0x10] sm:$0xff] }
 0x151   :  { %878 = vmatprep.subr.mxu1 %v1985_v21 }
 0x152   :  { %879 = vmatpush1.msra.mxu1 %v824_v26 }
 0x153   :  { %880 = vmatprep.subr.mxu1 %v1985_v21 }
 0x154   :  { %881 = vmatpush1.msra.mxu1 %v823_v27 }
 0x155   :  { %882 = vmatprep.subr.mxu1 %v1985_v21 }
 0x156   :  { %883 = vmatpush1.msra.mxu1 %v822_v28  ;;  %v1168_v28 = vld [vmem:[%s2978_s11 + $0x8] sm:$0xff] }
 0x157   :  { %884 = vmatprep.subr.mxu1 %v1985_v21 }
 0x158   :  { %885 = vmatpush1.msra.mxu1 %v821_v29 }
 0x159   :  { %886 = vmatprep.subr.mxu1 %v1985_v21 }
 0x15a   :  { %887 = vmatpush1.msra.mxu1 %v820_v30 }
 0x15b   :  { %888 = vmatprep.subr.mxu1 %v1985_v21 }
 0x15c   :  { %889 = vmatpush1.msra.mxu1 %v819_v31 }
 0x15d   :  { %890 = vmatprep.subr.mxu1 %v1985_v21 }
 0x15e   :  { %891 = vmatpush1.msra.mxu1 %v818_v32  ;;  %v1167_v32 = vld [vmem:[%s2978_s11] sm:$0xff] }
 0x15f   :  { %892 = vmatprep.subr.mxu1 %v1985_v21 }
 0x160   :  { %893 = vmatpush1.msra.mxu1 %v817_v33 }
 0x161   :  { %894 = vmatprep.subr.mxu1 %v1985_v21 }
 0x162   :  { %895 = vmatpush1.msra.mxu1 %v816_v34 }
 0x163   :  { %896 = vmatprep.subr.mxu1 %v1985_v21 }
 0x164   :  { %897 = vmatpush1.msra.mxu1 %v815_v35 }
 0x165   :  { %908 = vmatprep.subr.mxu1 %v1985_v21 }
 0x166   :  { %1654 = vmatpush2.msk.msra.mxu1 %vm862_vm3, %v841_v36 }
 0x167   :  { %910 = vmatprep.subr.mxu1 %v1985_v21 }
 0x168   :  { %911 = vmatpush2.msra.mxu1 %v840_v37  ;;  %v1248_v37 = vld [vmem:[%s2979_s12 + $0x18] sm:$0xff] }
 0x169   :  { %912 = vmatprep.subr.mxu1 %v1985_v21 }
 0x16a   :  { %913 = vmatpush2.msra.mxu1 %v839_v38  ;;  %v1247_v38 = vld [vmem:[%s2979_s12 + $0x10] sm:$0xff] }
 0x16b   :  { %914 = vmatprep.subr.mxu1 %v1985_v21 }
 0x16c   :  { %915 = vmatpush2.msra.mxu1 %v838_v39  ;;  %v1246_v39 = vld [vmem:[%s2979_s12 + $0x8] sm:$0xff] }
 0x16d   :  { %916 = vmatprep.subr.mxu1 %v1985_v21 }
 0x16e   :  { %917 = vmatpush2.msra.mxu1 %v837_v40  ;;  %v1245_v40 = vld [vmem:[%s2979_s12] sm:$0xff] }
 0x16f   :  { %918 = vmatprep.subr.mxu1 %v1985_v21 }
 0x170   :  { %919 = vmatpush2.msra.mxu1 %v836_v41  ;;  %v1476_v41 = vld [vmem:[%s2980_s15 + $0x8] sm:$0xff] }
 0x171   :  { %920 = vmatprep.subr.mxu1 %v1985_v21 }
 0x172   :  { %921 = vmatpush2.msra.mxu1 %v835_v42  ;;  %v1324_v42 = vld [vmem:[%s2981_s13 + $0x8] sm:$0xff] }
 0x173   :  { %922 = vmatprep.subr.mxu1 %v1985_v21 }
 0x174   :  { %923 = vmatpush2.msra.mxu1 %v834_v43  ;;  %v1475_v43 = vld [vmem:[%s2980_s15] sm:$0xff] }
 0x175   :  { %924 = vmatprep.subr.mxu1 %v1985_v21 }
 0x176   :  { %925 = vmatpush2.msra.mxu1 %v833_v44  ;;  %v1323_v44 = vld [vmem:[%s2981_s13] sm:$0xff] }
 0x177   :  { %926 = vmatprep.subr.mxu1 %v1985_v21 }
 0x178   :  { %927 = vmatpush2.msra.mxu1 %v832_v45 }
 0x179   :  { %928 = vmatprep.subr.mxu1 %v1985_v21 }
 0x17a   :  { %929 = vmatpush2.msra.mxu1 %v831_v46 }
 0x17b   :  { %931 = vmatmul.mubr.f32.vlgmr.msra.gmra.mxu1 %v807_v47  ;;  %1916 = vmatprep.subr.mxu1 %v1985_v21 }
 0x17c   :  { %1656 = vmatprep.mubr.msk.f32.mxu1 %vm849_vm2, %v810_v48  ;;  %1917 = vmatpush3.msra.mxu1 %v1086_v54 }
 0x17d   :  { %1918 = vmatprep.subr.mxu1 %v1985_v21 }
 0x17e   :  { %1919 = vmatpush3.msra.mxu1 %v1085_v55 }
 0x17f   :  { %936 = vmatmul.mubr.f32.gmra.mxu1 %v809_v49  ;;  %1920 = vmatprep.subr.mxu1 %v1985_v21  ;;  %v1659_v49 = vld [vmem:[%s2982_s9] ss:$0 sm:$0xff] }
 0x180   :  { %1657 = vmatprep.mubr.msk.f32.mxu1 %vm849_vm2, %v812_v50  ;;  %1921 = vmatpush3.msra.mxu1 %v1084_v56 }
 0x181   :  { %1922 = vmatprep.subr.mxu1 %v1985_v21 }
 0x182   :  { %1923 = vmatpush3.msra.mxu1 %v1083_v57 }
 0x183   :  { %941 = vmatmul.mubr.f32.gmra.mxu1 %v811_v51  ;;  %1963 = vmatprep.subr.mxu1 %v1985_v21  ;;  %v1665_v51 = vld [vmem:[%s2983_s16] ss:$0 sm:$0xff] }
 0x184   :  { %1658 = vmatprep.mubr.msk.f32.mxu1 %vm849_vm2, %v814_v52 }
 0x187   :  { %946 = vmatmul.mubr.f32.gmra.mxu1 %v813_v53 }
 0x188   :  { %1924 = vmatprep.mubr.msk.f32.mxu1 %vm1986_vm4, %v1985_v21 }
 0x205   :  { %v1902_v60 = vpop.f32.mrf.mxu1 }
 0x206   :  { %v794_v63 = vadd.f32 %v1902_v60, %v1648_v61 }
 0x207   :  { %v788_v62 = vpop.f32.mrf.mxu1 }
 0x208   :  { %v789_v0 = vadd.f32 %v1648_v61, %v788_v62 }
 0x20a   :  { %v1064_v1 = vmin.f32 %v789_v0, %v794_v63  ;;  %v1062_v4 = vadd.f32 %v794_v63, %v789_v0  ;;  %v1063_v30 = vmax.f32 %v789_v0, %v794_v63 }
 0x20d   :  { %v1905_v2 = vpop.f32.mrf.mxu1 }
 0x20e   :  { %v2855_v6 = vadd.f32 %v1905_v2, %v1648_v61 }
 0x20f   :  { %v798_v3 = vpop.f32.mrf.mxu1 }
 0x210   :  { %v799_v5 = vadd.f32 %v1648_v61, %v798_v3 }
 0x212   :  { %v1065_v7 = vadd.f32 %v1062_v4, %v799_v5  ;;  %v1067_v8 = vmin.f32 %v1064_v1, %v799_v5  ;;  %v1066_v34 = vmax.f32 %v1063_v30, %v799_v5 }
 0x214   :  { %v1068_v9 = vadd.f32 %v1065_v7, %v2855_v6  ;;  %v1070_v10 = vmin.f32 %v1067_v8, %v2855_v6  ;;  %v1069_v36 = vmax.f32 %v1066_v34, %v2855_v6  ;;  %v1400_v6 = vld [vmem:[%s2984_s14 + $0x8] sm:$0xff]  ;;  %v1399_v7 = vld [vmem:[%s2984_s14] sm:$0xff] }
 0x216   :  { %v1071_v11 = vmul.f32 0.25, %v1068_v9 }
 0x218   :  { %1925 = vmatmul.mubr.msk.f32.vlgmr.msra.gmra.mxu1 %vm709_vm1, %v1071_v11 }
 0x219   :  { %1967 = vmatprep.mubr.msk.f32.mxu1 %vm1986_vm4, %v1985_v21  ;;  %1964 = vmatpush3.msra.mxu1 %v1476_v41 }
 0x21a   :  { %1965 = vmatprep.subr.mxu1 %v1985_v21 }
 0x21b   :  { %1966 = vmatpush3.msra.mxu1 %v1475_v43 }
 0x23b   :  { %v932_v13 = vpop.f32.mrf.mxu1 }
 0x23c   :  { %v933_v14 = vadd.f32 %v1653_v12, %v932_v13  ;;  %v1554_v13 = vld [vmem:[%s2985_s17 + $0x10] sm:$0xff] }
 0x23d   :  { %v934_v15 = vpop.f32.mrf.mxu1 }
 0x23e   :  { %v951_v16 = vmax.f32 %v933_v14, 0.0  ;;  %v1553_v14 = vld [vmem:[%s2985_s17 + $0x8] sm:$0xff]  ;;  %v1552_v15 = vld [vmem:[%s2985_s17] sm:$0xff] }
 0x23f   :  { %v937_v17 = vpop.f32.mrf.mxu1 }
 0x240   :  { %v938_v18 = vadd.f32 %v1653_v12, %v937_v17  ;;  %1910 = vmatprep.mubr.msk.f32.mxu0 %vm964_vm5, %v951_v16 }
 0x241   :  { %v939_v19 = vpop.f32.mrf.mxu1 }
 0x242   :  { %v952_v20 = vmax.f32 %v938_v18, 0.0 }
 0x243   :  { %v942_v23 = vpop.f32.mrf.mxu1 }
 0x244   :  { %v943_v24 = vadd.f32 %v1653_v12, %v942_v23  ;;  %1911 = vmatmul.mubr.msk.f32.vlgmr.msra.gmra.mxu0 %vm964_vm5, %v952_v20 }
 0x245   :  { %v944_v26 = vpop.f32.mrf.mxu1  ;;  %1928 = vmatpush3.msra.mxu0 %v1170_v22 }
 0x246   :  { %v953_v27 = vmax.f32 %v943_v24, 0.0  ;;  %1929 = vmatprep.subr.mxu0 %v1985_v21 }
 0x247   :  { %v947_v29 = vpop.f32.mrf.mxu1  ;;  %1930 = vmatpush3.msra.mxu0 %v1169_v25 }
 0x248   :  { %v948_v31 = vadd.f32 %v1653_v12, %v947_v29  ;;  %1913 = vmatprep.mubr.msk.f32.mxu0 %vm964_vm5, %v953_v27  ;;  %1931 = vmatprep.subr.mxu0 %v1985_v21  ;;  %v1555_v12 = vld [vmem:[%s2985_s17 + $0x18] sm:$0xff]  ;;  %v1671_v27 = vld [vmem:[%s2986_s18] ss:$0 sm:$0xff] }
 0x249   :  { %v949_v33 = vpop.f32.mrf.mxu1  ;;  %1932 = vmatpush3.msra.mxu0 %v1168_v28 }
 0x24a   :  { %v954_v35 = vmax.f32 %v948_v31, 0.0  ;;  %1933 = vmatprep.subr.mxu0 %v1985_v21 }
 0x24b   :  { %1934 = vmatpush3.msra.mxu0 %v1167_v32 }
 0x24c   :  { %1914 = vmatmul.mubr.msk.f32.gmra.mxu0 %vm964_vm5, %v954_v35  ;;  %1938 = vmatprep.subr.mxu0 %v1985_v21 }
 0x24d   :  { %1935 = vmatprep.mubr.msk.f32.mxu0 %vm1986_vm4, %v1985_v21 }
 0x250   :  { %1936 = vmatmul.mubr.msk.f32.vlgmr.msra.gmra.mxu0 %vm709_vm1, %v1069_v36 }
 0x251   :  { %1939 = vmatpush3.msra.mxu0 %v1248_v37  ;;  %1946 = vmatprep.mubr.msk.f32.mxu0 %vm1986_vm4, %v1985_v21 }
 0x252   :  { %1940 = vmatprep.subr.mxu0 %v1985_v21 }
 0x253   :  { %1941 = vmatpush3.msra.mxu0 %v1247_v38 }
 0x254   :  { %1942 = vmatprep.subr.mxu0 %v1985_v21 }
 0x255   :  { %1943 = vmatpush3.msra.mxu0 %v1246_v39 }
 0x256   :  { %1944 = vmatprep.subr.mxu0 %v1985_v21 }
 0x257   :  { %1945 = vmatpush3.msra.mxu0 %v1245_v40 }
 0x258   :  { %1947 = vmatmul.mubr.msk.f32.vlgmr.msra.gmra.mxu0 %vm709_vm1, %v1070_v10  ;;  %1949 = vmatprep.subr.mxu0 %v1985_v21 }
 0x259   :  { %1953 = vmatprep.mubr.msk.f32.mxu0 %vm1986_vm4, %v1985_v21  ;;  %1950 = vmatpush3.msra.mxu0 %v1324_v42 }
 0x25a   :  { %1951 = vmatprep.subr.mxu0 %v1985_v21 }
 0x25b   :  { %1952 = vmatpush3.msra.mxu0 %v1323_v44 }
 0x25c   :  { %1956 = vmatprep.subr.mxu0 %v1985_v21 }
 0x2d8   :  { %v1156_v45 = vpop.f32.mrf.mxu1 }
 0x2d9   :  { %v1166_v55 = vadd.f32 %v1665_v51, %v1156_v45 }
 0x2da   :  { %v1926_v46 = vpop.f32.mrf.mxu1 }
 0x304   :  { %v1912_v47 = vpop.f32.mrf.mxu0 }
 0x305   :  { %v1049_v53 = vadd.f32 %v1912_v47, %v1659_v49 }
 0x306   :  { %v1043_v48 = vpop.f32.mrf.mxu0 }
 0x307   :  { %v1044_v50 = vadd.f32 %v1659_v49, %v1043_v48 }
 0x309   :  { %v1072_v56 = vadd.f32 %v1049_v53, %v1044_v50  ;;  %v1074_v57 = vmin.f32 %v1044_v50, %v1049_v53  ;;  %v1073_v1 = vmax.f32 %v1044_v50, %v1049_v53 }
 0x30c   :  { %v1915_v52 = vpop.f32.mrf.mxu0 }
 0x30d   :  { %v1059_v60 = vadd.f32 %v1915_v52, %v1659_v49 }
 0x30e   :  { %v1053_v54 = vpop.f32.mrf.mxu0 }
 0x30f   :  { %v1054_v58 = vadd.f32 %v1659_v49, %v1053_v54 }
 0x310   :  { %v1240_v59 = vpop.f32.mrf.mxu0 }
 0x311   :  { %v1075_v61 = vadd.f32 %v1072_v56, %v1054_v58  ;;  %v1077_v62 = vmin.f32 %v1074_v57, %v1054_v58  ;;  %v1244_v63 = vadd.f32 %v1240_v59, %v1166_v55  ;;  %v1076_v4 = vmax.f32 %v1073_v1, %v1054_v58 }
 0x312   :  { %v1937_v0 = vpop.f32.mrf.mxu0 }
 0x313   :  { %v1078_v2 = vadd.f32 %v1075_v61, %v1059_v60  ;;  %v1080_v3 = vmin.f32 %v1077_v62, %v1059_v60  ;;  %v1079_v9 = vmax.f32 %v1076_v4, %v1059_v60 }
 0x315   :  { %v1081_v5 = vmul.f32 0.25, %v1078_v2  ;;  %1968 = vmatmul.mubr.msk.f32.vlgmr.msra.gmra.mxu1 %vm964_vm5, %v1080_v3 }
 0x317   :  { %1954 = vmatmul.mubr.msk.f32.vlgmr.msra.gmra.mxu0 %vm964_vm5, %v1081_v5 }
 0x318   :  { %v1318_v8 = vpop.f32.mrf.mxu0  ;;  %1957 = vmatpush3.msra.mxu0 %v1400_v6  ;;  %1960 = vmatprep.mubr.msk.f32.mxu0 %vm1986_vm4, %v1985_v21 }
 0x319   :  { %v1322_v10 = vadd.f32 %v1318_v8, %v1244_v63  ;;  %1958 = vmatprep.subr.mxu0 %v1985_v21 }
 0x31a   :  { %v1948_v11 = vpop.f32.mrf.mxu0  ;;  %1959 = vmatpush3.msra.mxu0 %v1399_v7 }
 0x31b   :  { %1961 = vmatmul.mubr.msk.f32.vlgmr.msra.gmra.mxu0 %vm964_vm5, %v1079_v9  ;;  %1970 = vmatprep.subr.mxu0 %v1985_v21 }
 0x31c   :  { %1978 = vmatprep.mubr.msk.f32.mxu0 %vm1986_vm4, %v1985_v21  ;;  %1971 = vmatpush3.msra.mxu0 %v1555_v12 }
 0x31d   :  { %1972 = vmatprep.subr.mxu0 %v1985_v21 }
 0x31e   :  { %1973 = vmatpush3.msra.mxu0 %v1554_v13 }
 0x31f   :  { %1974 = vmatprep.subr.mxu0 %v1985_v21 }
 0x320   :  { %1975 = vmatpush3.msra.mxu0 %v1553_v14 }
 0x321   :  { %1976 = vmatprep.subr.mxu0 %v1985_v21 }
 0x322   :  { %1977 = vmatpush3.msra.mxu0 %v1552_v15 }
 0x3d5   :  { %v1546_v16 = vpop.f32.mrf.mxu1 }
 0x3d7   :  { %v1394_v17 = vpop.f32.mrf.mxu0  ;;  %v1969_v18 = vpop.f32.mrf.mxu1 }
 0x3d8   :  { %v1398_v20 = vadd.f32 %v1394_v17, %v1322_v10 }
 0x3d9   :  { %v1955_v19 = vpop.f32.mrf.mxu0 }
 0x3db   :  { %v1470_v22 = vpop.f32.mrf.mxu0 }
 0x3dc   :  { %v1474_v23 = vadd.f32 %v1470_v22, %v1398_v20 }
 0x3dd   :  { %v1962_v24 = vpop.f32.mrf.mxu0 }
 0x3de   :  { %v1550_v25 = vadd.f32 %v1546_v16, %v1474_v23 }
 0x3e0   :  { %v1551_v26 = vmax.f32 %v1550_v25, 0.0 }
 0x3e2   :  { %1979 = vmatmul.mubr.msk.f32.vlgmr.msra.gmra.mxu0 %vm709_vm1, %v1551_v26 }
 0x4a2   :  { %v1632_v28 = vpop.f32.mrf.mxu0 }
 0x4a3   :  { %v1633_v29 = vadd.f32 %v1671_v27, %v1632_v28 }
 0x4a4   :  { %v1980_v21 = vpop.f32.mrf.mxu0 }
 0x4a5   :  { %1983 = vtanh.f32 %v1633_v29 }
 0x4b2   :  { %v1984_v30 = vpop.eup %1983 }
 0x4b3   :  { %v1637_v31 = vmul.f32 8.0, %v1984_v30 }
 0x4b5   :  { %1638 = vst [vmem:[%s2987_s19] sm:$0xff] %v1637_v31 }

</bundles_post_ra>
